<compile_context>
chip_gen: v7x
topology: tpu7x:2x2x1
jax: 0.10.0
libtpu: 0.0.40
codegen_flags: <defaults>
</compile_context>

<pallas_src>
import jax
import jax.numpy as jnp
from jax.experimental import pallas as pl
from jax.experimental.pallas import tpu as pltpu

EPS = 1e-5  # PyTorch InstanceNorm2d default (module uses affine=True)


def _make_kernel(C, H, W):
    HW = H * W
    NW = 9 * C  # packed columns per conv weight

    def kernel(x_ref, p_ref, o_ref):
        x = x_ref[0].astype(jnp.float32)      # (C, HW)  lane-dense
        p = p_ref[...].astype(jnp.float32)    # (C, 2*9C + 6)

        w1 = p[:, 0:NW]                        # (C_out, 9*C_in)
        w2 = p[:, NW:2 * NW]
        b1 = p[:, 2 * NW + 0:2 * NW + 1]       # (C, 1) columns
        g1 = p[:, 2 * NW + 1:2 * NW + 2]
        be1 = p[:, 2 * NW + 2:2 * NW + 3]
        b2 = p[:, 2 * NW + 3:2 * NW + 4]
        g2 = p[:, 2 * NW + 4:2 * NW + 5]
        be2 = p[:, 2 * NW + 5:2 * NW + 6]

        # reflect-edge masks on the flat (row-major) spatial axis, hoisted once
        pos = jax.lax.broadcasted_iota(jnp.int32, (C, HW), 1)
        col = pos % W
        w_first = col == 0
        w_last = col == (W - 1)
        h_first = pos < W
        h_last = pos >= (H - 1) * W

        def conv3x3(a, wcols, bias_col):
            """3x3 conv, stride 1, reflect padding 1, on a (C_in, H*W) slab."""
            # shifts along W (lane axis), reflect fix at w==0 / w==W-1
            nxt = pltpu.roll(a, HW - 1, axis=1)   # a[.., p+1]
            prv = pltpu.roll(a, 1, axis=1)        # a[.., p-1]
            xs = {
                -1: jnp.where(w_first, nxt, prv),   # x[.., w-1] (reflect)
                0: a,
                1: jnp.where(w_last, prv, nxt),     # x[.., w+1] (reflect)
            }
            taps = {}
            for dx in (-1, 0, 1):
                s = xs[dx]
                dn = pltpu.roll(s, HW - W, axis=1)  # s[.., h+1, w]
                up = pltpu.roll(s, W, axis=1)       # s[.., h-1, w]
                taps[(-1, dx)] = jnp.where(h_first, dn, up)
                taps[(0, dx)] = s
                taps[(1, dx)] = jnp.where(h_last, up, dn)

            acc = jnp.broadcast_to(bias_col, (C, HW))
            for ky in range(3):
                for kx in range(3):
                    t = taps[(ky - 1, kx - 1)]      # (C_in, HW)
                    for ci in range(C):
                        idx = (ky * 3 + kx) * C + ci
                        # (C_out,1) weight column * (1,HW) tap row -> (C_out,HW) FMA
                        acc = acc + wcols[:, idx:idx + 1] * t[ci:ci + 1, :]
            return acc

        def instance_norm(a, g_col, b_col):
            m = jnp.mean(a, axis=1, keepdims=True)
            d = a - m
            v = jnp.mean(d * d, axis=1, keepdims=True)
            return d * jax.lax.rsqrt(v + EPS) * g_col + b_col

        y = conv3x3(x, w1, b1)
        y = jnp.maximum(instance_norm(y, g1, be1), 0.0)
        y = conv3x3(y, w2, b2)
        y = instance_norm(y, g2, be2)
        o_ref[0] = (y + x).astype(o_ref.dtype)

    return kernel


def _pack_params(params, C):
    """Pack (w1,b1,g1,be1,w2,b2,g2,be2) into one (C, 18C+6) f32 array (1 DMA/step)."""
    w1, b1, g1, be1, w2, b2, g2, be2 = params

    def cols(w):  # HWIO (3,3,Cin,Cout) -> (Cout, 9*Cin), tap-major / ci-minor
        return jnp.transpose(w, (3, 0, 1, 2)).reshape(C, 9 * C)

    vec_cols = jnp.concatenate(
        [v.reshape(C, 1) for v in (b1, g1, be1, b2, g2, be2)], axis=1)
    return jnp.concatenate([cols(w1), cols(w2), vec_cols],
                           axis=1).astype(jnp.float32)


@jax.jit
def residual_block(x_nchw, params):
    N, C, H, W = x_nchw.shape
    HW = H * W
    x2d = x_nchw.reshape(N, C, HW)          # free reshape: H*W on the lane axis
    p = _pack_params(params, C)
    ncols = p.shape[1]

    out = pl.pallas_call(
        _make_kernel(C, H, W),
        out_shape=jax.ShapeDtypeStruct((N, C, HW), x_nchw.dtype),
        grid_spec=pltpu.PrefetchScalarGridSpec(
            num_scalar_prefetch=0,
            grid=(N,),
            in_specs=[
                pl.BlockSpec((1, C, HW), lambda n: (n, 0, 0)),   # one sample
                pl.BlockSpec((C, ncols), lambda n: (0, 0)),      # packed params
            ],
            out_specs=pl.BlockSpec((1, C, HW), lambda n: (n, 0, 0)),
        ),
        compiler_params=pltpu.CompilerParams(
            dimension_semantics=("parallel",)),
    )(x2d, p)
    return out.reshape(N, C, H, W)


# ---------------- pure-JAX reference (for correctness check) ----------------
def residual_block_ref(x_nchw, params):
    w1, b1, g1, be1, w2, b2, g2, be2 = params
    x = jnp.transpose(x_nchw, (0, 2, 3, 1))  # NHWC

    def conv(a, w, b):
        ap = jnp.pad(a, ((0, 0), (1, 1), (1, 1), (0, 0)), mode="reflect")
        y = jax.lax.conv_general_dilated(
            ap, w, window_strides=(1, 1), padding="VALID",
            dimension_numbers=("NHWC", "HWIO", "NHWC"))
        return y + b

    def inorm(a, g, b):
        m = jnp.mean(a, axis=(1, 2), keepdims=True)
        v = jnp.mean((a - m) ** 2, axis=(1, 2), keepdims=True)
        return (a - m) * jax.lax.rsqrt(v + EPS) * g + b

    y = jax.nn.relu(inorm(conv(x, w1, b1), g1, be1))
    y = inorm(conv(y, w2, b2), g2, be2)
    return jnp.transpose(y + x, (0, 3, 1, 2))


def init_params(key, channels):
    ks = jax.random.split(key, 8)
    C = channels
    w1 = 0.1 * jax.random.normal(ks[0], (3, 3, C, C), jnp.float32)   # HWIO
    b1 = 0.1 * jax.random.normal(ks[1], (1, C), jnp.float32)
    g1 = 1.0 + 0.1 * jax.random.normal(ks[2], (1, C), jnp.float32)
    be1 = 0.1 * jax.random.normal(ks[3], (1, C), jnp.float32)
    w2 = 0.1 * jax.random.normal(ks[4], (3, 3, C, C), jnp.float32)
    b2 = 0.1 * jax.random.normal(ks[5], (1, C), jnp.float32)
    g2 = 1.0 + 0.1 * jax.random.normal(ks[6], (1, C), jnp.float32)
    be2 = 0.1 * jax.random.normal(ks[7], (1, C), jnp.float32)
    return (w1, b1, g1, be1, w2, b2, g2, be2)


if __name__ == "__main__":
    key = jax.random.PRNGKey(0)
    k_x, k_p = jax.random.split(key)

    N, C, H, W = 2, 4, 16, 16   # PyTorch NCHW input
    x = jax.random.normal(k_x, (N, C, H, W), jnp.float32)
    params = init_params(k_p, C)

    out = jax.block_until_ready(residual_block(x, params))
    ref = jax.block_until_ready(residual_block_ref(x, params))

    assert out.shape == (N, C, H, W)
    max_err = float(jnp.max(jnp.abs(out - ref)))
    assert max_err < 1e-4, f"mismatch vs reference: {max_err}"

    print("KERNEL_OK")
</pallas_src>

<mosaic_0001>
module attributes {stable_mosaic.version = 11 : i64} {
  func.func @kernel(%arg0: i32, %arg1: memref<1x4x256xf32, #tpu.memory_space<vmem>>, %arg2: memref<4x78xf32, #tpu.memory_space<vmem>>, %arg3: memref<1x4x256xf32, #tpu.memory_space<vmem>>) attributes {dimension_semantics = [#tpu.dimension_semantics<parallel>], iteration_bounds = array<i64: 2>, scalar_prefetch = 0 : i64, scratch_operands = 0 : i64, tpu.core_type = #tpu.core_type<tc>, window_params = [{transform_indices = @transform_0, window_bounds = array<i64: 1, 4, 256>}, {pipeline_mode = #tpu.pipeline_mode<synchronous>, transform_indices = @transform_1, window_bounds = array<i64: 4, 78>}, {transform_indices = @transform_2, window_bounds = array<i64: 1, 4, 256>}]} {
    %c0 = arith.constant 0 : index
    %c0_0 = arith.constant 0 : index
    %c0_1 = arith.constant 0 : index
    %0 = vector.load %arg1[%c0, %c0_0, %c0_1] : memref<1x4x256xf32, #tpu.memory_space<vmem>>, vector<1x4x256xf32>
    %1 = vector.shape_cast %0 : vector<1x4x256xf32> to vector<4x256xf32>
    %c0_2 = arith.constant 0 : index
    %c0_3 = arith.constant 0 : index
    %2 = vector.load %arg2[%c0_2, %c0_3] : memref<4x78xf32, #tpu.memory_space<vmem>>, vector<4x78xf32>
    %3 = vector.extract_strided_slice %2 {offsets = [0, 0], sizes = [4, 36], strides = [1, 1]} : vector<4x78xf32> to vector<4x36xf32>
    %4 = vector.extract_strided_slice %2 {offsets = [0, 36], sizes = [4, 36], strides = [1, 1]} : vector<4x78xf32> to vector<4x36xf32>
    %5 = vector.extract_strided_slice %2 {offsets = [0, 72], sizes = [4, 1], strides = [1, 1]} : vector<4x78xf32> to vector<4x1xf32>
    %6 = vector.extract_strided_slice %2 {offsets = [0, 73], sizes = [4, 1], strides = [1, 1]} : vector<4x78xf32> to vector<4x1xf32>
    %7 = vector.extract_strided_slice %2 {offsets = [0, 74], sizes = [4, 1], strides = [1, 1]} : vector<4x78xf32> to vector<4x1xf32>
    %8 = vector.extract_strided_slice %2 {offsets = [0, 75], sizes = [4, 1], strides = [1, 1]} : vector<4x78xf32> to vector<4x1xf32>
    %9 = vector.extract_strided_slice %2 {offsets = [0, 76], sizes = [4, 1], strides = [1, 1]} : vector<4x78xf32> to vector<4x1xf32>
    %10 = vector.extract_strided_slice %2 {offsets = [0, 77], sizes = [4, 1], strides = [1, 1]} : vector<4x78xf32> to vector<4x1xf32>
    %11 = tpu.iota {dimensions = array<i32: 1>} : vector<4x256xi32>
    %c16_i32 = arith.constant 16 : i32
    %c0_i32 = arith.constant 0 : i32
    %12 = arith.cmpi eq, %c16_i32, %c0_i32 : i32
    %c1_i32 = arith.constant 1 : i32
    %13 = arith.select %12, %c1_i32, %c16_i32 : i32
    %14 = vector.broadcast %13 : i32 to vector<4x256xi32>
    %15 = arith.remsi %11, %14 : vector<4x256xi32>
    %c0_i32_4 = arith.constant 0 : i32
    %16 = vector.broadcast %c0_i32_4 : i32 to vector<4x256xi32>
    %17 = arith.cmpi ne, %15, %16 : vector<4x256xi32>
    %c0_i32_5 = arith.constant 0 : i32
    %18 = vector.broadcast %c0_i32_5 : i32 to vector<4x256xi32>
    %19 = arith.cmpi slt, %15, %18 : vector<4x256xi32>
    %c0_i32_6 = arith.constant 0 : i32
    %20 = arith.cmpi slt, %13, %c0_i32_6 : i32
    %21 = vector.broadcast %20 : i1 to vector<4x256xi1>
    %22 = vector.broadcast %21 : vector<4x256xi1> to vector<4x256xi1>
    %23 = arith.xori %19, %22 : vector<4x256xi1>
    %24 = arith.andi %23, %17 : vector<4x256xi1>
    %25 = vector.broadcast %13 : i32 to vector<4x256xi32>
    %26 = arith.addi %15, %25 : vector<4x256xi32>
    %27 = arith.select %24, %26, %15 : vector<4x256xi1>, vector<4x256xi32>
    %c0_i32_7 = arith.constant 0 : i32
    %28 = vector.broadcast %c0_i32_7 : i32 to vector<4x256xi32>
    %29 = arith.cmpi eq, %27, %28 : vector<4x256xi32>
    %c15_i32 = arith.constant 15 : i32
    %30 = vector.broadcast %c15_i32 : i32 to vector<4x256xi32>
    %31 = arith.cmpi eq, %27, %30 : vector<4x256xi32>
    %c16_i32_8 = arith.constant 16 : i32
    %32 = vector.broadcast %c16_i32_8 : i32 to vector<4x256xi32>
    %33 = arith.cmpi slt, %11, %32 : vector<4x256xi32>
    %c240_i32 = arith.constant 240 : i32
    %34 = vector.broadcast %c240_i32 : i32 to vector<4x256xi32>
    %35 = arith.cmpi sge, %11, %34 : vector<4x256xi32>
    %c255_i32 = arith.constant 255 : i32
    %36 = tpu.dynamic_rotate %1 by %c255_i32 dim 1 : vector<4x256xf32>, i32 -> vector<4x256xf32>
    %c1_i32_9 = arith.constant 1 : i32
    %37 = tpu.dynamic_rotate %1 by %c1_i32_9 dim 1 : vector<4x256xf32>, i32 -> vector<4x256xf32>
    %38 = arith.select %29, %36, %37 : vector<4x256xi1>, vector<4x256xf32>
    %39 = arith.select %31, %37, %36 : vector<4x256xi1>, vector<4x256xf32>
    %c240_i32_10 = arith.constant 240 : i32
    %40 = tpu.dynamic_rotate %38 by %c240_i32_10 dim 1 : vector<4x256xf32>, i32 -> vector<4x256xf32>
    %c16_i32_11 = arith.constant 16 : i32
    %41 = tpu.dynamic_rotate %38 by %c16_i32_11 dim 1 : vector<4x256xf32>, i32 -> vector<4x256xf32>
    %42 = arith.select %33, %40, %41 : vector<4x256xi1>, vector<4x256xf32>
    %43 = arith.select %35, %41, %40 : vector<4x256xi1>, vector<4x256xf32>
    %c240_i32_12 = arith.constant 240 : i32
    %44 = tpu.dynamic_rotate %1 by %c240_i32_12 dim 1 : vector<4x256xf32>, i32 -> vector<4x256xf32>
    %c16_i32_13 = arith.constant 16 : i32
    %45 = tpu.dynamic_rotate %1 by %c16_i32_13 dim 1 : vector<4x256xf32>, i32 -> vector<4x256xf32>
    %46 = arith.select %33, %44, %45 : vector<4x256xi1>, vector<4x256xf32>
    %47 = arith.select %35, %45, %44 : vector<4x256xi1>, vector<4x256xf32>
    %c240_i32_14 = arith.constant 240 : i32
    %48 = tpu.dynamic_rotate %39 by %c240_i32_14 dim 1 : vector<4x256xf32>, i32 -> vector<4x256xf32>
    %c16_i32_15 = arith.constant 16 : i32
    %49 = tpu.dynamic_rotate %39 by %c16_i32_15 dim 1 : vector<4x256xf32>, i32 -> vector<4x256xf32>
    %50 = arith.select %33, %48, %49 : vector<4x256xi1>, vector<4x256xf32>
    %51 = arith.select %35, %49, %48 : vector<4x256xi1>, vector<4x256xf32>
    %52 = vector.shape_cast %5 : vector<4x1xf32> to vector<4x1xf32>
    %53 = vector.broadcast %52 : vector<4x1xf32> to vector<4x256xf32>
    %54 = vector.extract_strided_slice %3 {offsets = [0, 0], sizes = [4, 1], strides = [1, 1]} : vector<4x36xf32> to vector<4x1xf32>
    %55 = vector.extract_strided_slice %42 {offsets = [0, 0], sizes = [1, 256], strides = [1, 1]} : vector<4x256xf32> to vector<1x256xf32>
    %56 = vector.broadcast %54 : vector<4x1xf32> to vector<4x256xf32>
    %57 = vector.broadcast %55 : vector<1x256xf32> to vector<4x256xf32>
    %58 = arith.mulf %56, %57 : vector<4x256xf32>
    %59 = arith.addf %53, %58 : vector<4x256xf32>
    %60 = vector.extract_strided_slice %3 {offsets = [0, 1], sizes = [4, 1], strides = [1, 1]} : vector<4x36xf32> to vector<4x1xf32>
    %61 = vector.extract_strided_slice %42 {offsets = [1, 0], sizes = [1, 256], strides = [1, 1]} : vector<4x256xf32> to vector<1x256xf32>
    %62 = vector.broadcast %60 : vector<4x1xf32> to vector<4x256xf32>
    %63 = vector.broadcast %61 : vector<1x256xf32> to vector<4x256xf32>
    %64 = arith.mulf %62, %63 : vector<4x256xf32>
    %65 = arith.addf %59, %64 : vector<4x256xf32>
    %66 = vector.extract_strided_slice %3 {offsets = [0, 2], sizes = [4, 1], strides = [1, 1]} : vector<4x36xf32> to vector<4x1xf32>
    %67 = vector.extract_strided_slice %42 {offsets = [2, 0], sizes = [1, 256], strides = [1, 1]} : vector<4x256xf32> to vector<1x256xf32>
    %68 = vector.broadcast %66 : vector<4x1xf32> to vector<4x256xf32>
    %69 = vector.broadcast %67 : vector<1x256xf32> to vector<4x256xf32>
    %70 = arith.mulf %68, %69 : vector<4x256xf32>
    %71 = arith.addf %65, %70 : vector<4x256xf32>
    %72 = vector.extract_strided_slice %3 {offsets = [0, 3], sizes = [4, 1], strides = [1, 1]} : vector<4x36xf32> to vector<4x1xf32>
    %73 = vector.extract_strided_slice %42 {offsets = [3, 0], sizes = [1, 256], strides = [1, 1]} : vector<4x256xf32> to vector<1x256xf32>
    %74 = vector.broadcast %72 : vector<4x1xf32> to vector<4x256xf32>
    %75 = vector.broadcast %73 : vector<1x256xf32> to vector<4x256xf32>
    %76 = arith.mulf %74, %75 : vector<4x256xf32>
    %77 = arith.addf %71, %76 : vector<4x256xf32>
    %78 = vector.extract_strided_slice %3 {offsets = [0, 4], sizes = [4, 1], strides = [1, 1]} : vector<4x36xf32> to vector<4x1xf32>
    %79 = vector.extract_strided_slice %46 {offsets = [0, 0], sizes = [1, 256], strides = [1, 1]} : vector<4x256xf32> to vector<1x256xf32>
    %80 = vector.broadcast %78 : vector<4x1xf32> to vector<4x256xf32>
    %81 = vector.broadcast %79 : vector<1x256xf32> to vector<4x256xf32>
    %82 = arith.mulf %80, %81 : vector<4x256xf32>
    %83 = arith.addf %77, %82 : vector<4x256xf32>
    %84 = vector.extract_strided_slice %3 {offsets = [0, 5], sizes = [4, 1], strides = [1, 1]} : vector<4x36xf32> to vector<4x1xf32>
    %85 = vector.extract_strided_slice %46 {offsets = [1, 0], sizes = [1, 256], strides = [1, 1]} : vector<4x256xf32> to vector<1x256xf32>
    %86 = vector.broadcast %84 : vector<4x1xf32> to vector<4x256xf32>
    %87 = vector.broadcast %85 : vector<1x256xf32> to vector<4x256xf32>
    %88 = arith.mulf %86, %87 : vector<4x256xf32>
    %89 = arith.addf %83, %88 : vector<4x256xf32>
    %90 = vector.extract_strided_slice %3 {offsets = [0, 6], sizes = [4, 1], strides = [1, 1]} : vector<4x36xf32> to vector<4x1xf32>
    %91 = vector.extract_strided_slice %46 {offsets = [2, 0], sizes = [1, 256], strides = [1, 1]} : vector<4x256xf32> to vector<1x256xf32>
    %92 = vector.broadcast %90 : vector<4x1xf32> to vector<4x256xf32>
    %93 = vector.broadcast %91 : vector<1x256xf32> to vector<4x256xf32>
    %94 = arith.mulf %92, %93 : vector<4x256xf32>
    %95 = arith.addf %89, %94 : vector<4x256xf32>
    %96 = vector.extract_strided_slice %3 {offsets = [0, 7], sizes = [4, 1], strides = [1, 1]} : vector<4x36xf32> to vector<4x1xf32>
    %97 = vector.extract_strided_slice %46 {offsets = [3, 0], sizes = [1, 256], strides = [1, 1]} : vector<4x256xf32> to vector<1x256xf32>
    %98 = vector.broadcast %96 : vector<4x1xf32> to vector<4x256xf32>
    %99 = vector.broadcast %97 : vector<1x256xf32> to vector<4x256xf32>
    %100 = arith.mulf %98, %99 : vector<4x256xf32>
    %101 = arith.addf %95, %100 : vector<4x256xf32>
    %102 = vector.extract_strided_slice %3 {offsets = [0, 8], sizes = [4, 1], strides = [1, 1]} : vector<4x36xf32> to vector<4x1xf32>
    %103 = vector.extract_strided_slice %50 {offsets = [0, 0], sizes = [1, 256], strides = [1, 1]} : vector<4x256xf32> to vector<1x256xf32>
    %104 = vector.broadcast %102 : vector<4x1xf32> to vector<4x256xf32>
    %105 = vector.broadcast %103 : vector<1x256xf32> to vector<4x256xf32>
    %106 = arith.mulf %104, %105 : vector<4x256xf32>
    %107 = arith.addf %101, %106 : vector<4x256xf32>
    %108 = vector.extract_strided_slice %3 {offsets = [0, 9], sizes = [4, 1], strides = [1, 1]} : vector<4x36xf32> to vector<4x1xf32>
    %109 = vector.extract_strided_slice %50 {offsets = [1, 0], sizes = [1, 256], strides = [1, 1]} : vector<4x256xf32> to vector<1x256xf32>
    %110 = vector.broadcast %108 : vector<4x1xf32> to vector<4x256xf32>
    %111 = vector.broadcast %109 : vector<1x256xf32> to vector<4x256xf32>
    %112 = arith.mulf %110, %111 : vector<4x256xf32>
    %113 = arith.addf %107, %112 : vector<4x256xf32>
    %114 = vector.extract_strided_slice %3 {offsets = [0, 10], sizes = [4, 1], strides = [1, 1]} : vector<4x36xf32> to vector<4x1xf32>
    %115 = vector.extract_strided_slice %50 {offsets = [2, 0], sizes = [1, 256], strides = [1, 1]} : vector<4x256xf32> to vector<1x256xf32>
    %116 = vector.broadcast %114 : vector<4x1xf32> to vector<4x256xf32>
    %117 = vector.broadcast %115 : vector<1x256xf32> to vector<4x256xf32>
    %118 = arith.mulf %116, %117 : vector<4x256xf32>
    %119 = arith.addf %113, %118 : vector<4x256xf32>
    %120 = vector.extract_strided_slice %3 {offsets = [0, 11], sizes = [4, 1], strides = [1, 1]} : vector<4x36xf32> to vector<4x1xf32>
    %121 = vector.extract_strided_slice %50 {offsets = [3, 0], sizes = [1, 256], strides = [1, 1]} : vector<4x256xf32> to vector<1x256xf32>
    %122 = vector.broadcast %120 : vector<4x1xf32> to vector<4x256xf32>
    %123 = vector.broadcast %121 : vector<1x256xf32> to vector<4x256xf32>
    %124 = arith.mulf %122, %123 : vector<4x256xf32>
    %125 = arith.addf %119, %124 : vector<4x256xf32>
    %126 = vector.extract_strided_slice %3 {offsets = [0, 12], sizes = [4, 1], strides = [1, 1]} : vector<4x36xf32> to vector<4x1xf32>
    %127 = vector.extract_strided_slice %38 {offsets = [0, 0], sizes = [1, 256], strides = [1, 1]} : vector<4x256xf32> to vector<1x256xf32>
    %128 = vector.broadcast %126 : vector<4x1xf32> to vector<4x256xf32>
    %129 = vector.broadcast %127 : vector<1x256xf32> to vector<4x256xf32>
    %130 = arith.mulf %128, %129 : vector<4x256xf32>
    %131 = arith.addf %125, %130 : vector<4x256xf32>
    %132 = vector.extract_strided_slice %3 {offsets = [0, 13], sizes = [4, 1], strides = [1, 1]} : vector<4x36xf32> to vector<4x1xf32>
    %133 = vector.extract_strided_slice %38 {offsets = [1, 0], sizes = [1, 256], strides = [1, 1]} : vector<4x256xf32> to vector<1x256xf32>
    %134 = vector.broadcast %132 : vector<4x1xf32> to vector<4x256xf32>
    %135 = vector.broadcast %133 : vector<1x256xf32> to vector<4x256xf32>
    %136 = arith.mulf %134, %135 : vector<4x256xf32>
    %137 = arith.addf %131, %136 : vector<4x256xf32>
    %138 = vector.extract_strided_slice %3 {offsets = [0, 14], sizes = [4, 1], strides = [1, 1]} : vector<4x36xf32> to vector<4x1xf32>
    %139 = vector.extract_strided_slice %38 {offsets = [2, 0], sizes = [1, 256], strides = [1, 1]} : vector<4x256xf32> to vector<1x256xf32>
    %140 = vector.broadcast %138 : vector<4x1xf32> to vector<4x256xf32>
    %141 = vector.broadcast %139 : vector<1x256xf32> to vector<4x256xf32>
    %142 = arith.mulf %140, %141 : vector<4x256xf32>
    %143 = arith.addf %137, %142 : vector<4x256xf32>
    %144 = vector.extract_strided_slice %3 {offsets = [0, 15], sizes = [4, 1], strides = [1, 1]} : vector<4x36xf32> to vector<4x1xf32>
    %145 = vector.extract_strided_slice %38 {offsets = [3, 0], sizes = [1, 256], strides = [1, 1]} : vector<4x256xf32> to vector<1x256xf32>
    %146 = vector.broadcast %144 : vector<4x1xf32> to vector<4x256xf32>
    %147 = vector.broadcast %145 : vector<1x256xf32> to vector<4x256xf32>
    %148 = arith.mulf %146, %147 : vector<4x256xf32>
    %149 = arith.addf %143, %148 : vector<4x256xf32>
    %150 = vector.extract_strided_slice %3 {offsets = [0, 16], sizes = [4, 1], strides = [1, 1]} : vector<4x36xf32> to vector<4x1xf32>
    %151 = vector.extract_strided_slice %1 {offsets = [0, 0], sizes = [1, 256], strides = [1, 1]} : vector<4x256xf32> to vector<1x256xf32>
    %152 = vector.broadcast %150 : vector<4x1xf32> to vector<4x256xf32>
    %153 = vector.broadcast %151 : vector<1x256xf32> to vector<4x256xf32>
    %154 = arith.mulf %152, %153 : vector<4x256xf32>
    %155 = arith.addf %149, %154 : vector<4x256xf32>
    %156 = vector.extract_strided_slice %3 {offsets = [0, 17], sizes = [4, 1], strides = [1, 1]} : vector<4x36xf32> to vector<4x1xf32>
    %157 = vector.extract_strided_slice %1 {offsets = [1, 0], sizes = [1, 256], strides = [1, 1]} : vector<4x256xf32> to vector<1x256xf32>
    %158 = vector.broadcast %156 : vector<4x1xf32> to vector<4x256xf32>
    %159 = vector.broadcast %157 : vector<1x256xf32> to vector<4x256xf32>
    %160 = arith.mulf %158, %159 : vector<4x256xf32>
    %161 = arith.addf %155, %160 : vector<4x256xf32>
    %162 = vector.extract_strided_slice %3 {offsets = [0, 18], sizes = [4, 1], strides = [1, 1]} : vector<4x36xf32> to vector<4x1xf32>
    %163 = vector.extract_strided_slice %1 {offsets = [2, 0], sizes = [1, 256], strides = [1, 1]} : vector<4x256xf32> to vector<1x256xf32>
    %164 = vector.broadcast %162 : vector<4x1xf32> to vector<4x256xf32>
    %165 = vector.broadcast %163 : vector<1x256xf32> to vector<4x256xf32>
    %166 = arith.mulf %164, %165 : vector<4x256xf32>
    %167 = arith.addf %161, %166 : vector<4x256xf32>
    %168 = vector.extract_strided_slice %3 {offsets = [0, 19], sizes = [4, 1], strides = [1, 1]} : vector<4x36xf32> to vector<4x1xf32>
    %169 = vector.extract_strided_slice %1 {offsets = [3, 0], sizes = [1, 256], strides = [1, 1]} : vector<4x256xf32> to vector<1x256xf32>
    %170 = vector.broadcast %168 : vector<4x1xf32> to vector<4x256xf32>
    %171 = vector.broadcast %169 : vector<1x256xf32> to vector<4x256xf32>
    %172 = arith.mulf %170, %171 : vector<4x256xf32>
    %173 = arith.addf %167, %172 : vector<4x256xf32>
    %174 = vector.extract_strided_slice %3 {offsets = [0, 20], sizes = [4, 1], strides = [1, 1]} : vector<4x36xf32> to vector<4x1xf32>
    %175 = vector.extract_strided_slice %39 {offsets = [0, 0], sizes = [1, 256], strides = [1, 1]} : vector<4x256xf32> to vector<1x256xf32>
    %176 = vector.broadcast %174 : vector<4x1xf32> to vector<4x256xf32>
    %177 = vector.broadcast %175 : vector<1x256xf32> to vector<4x256xf32>
    %178 = arith.mulf %176, %177 : vector<4x256xf32>
    %179 = arith.addf %173, %178 : vector<4x256xf32>
    %180 = vector.extract_strided_slice %3 {offsets = [0, 21], sizes = [4, 1], strides = [1, 1]} : vector<4x36xf32> to vector<4x1xf32>
    %181 = vector.extract_strided_slice %39 {offsets = [1, 0], sizes = [1, 256], strides = [1, 1]} : vector<4x256xf32> to vector<1x256xf32>
    %182 = vector.broadcast %180 : vector<4x1xf32> to vector<4x256xf32>
    %183 = vector.broadcast %181 : vector<1x256xf32> to vector<4x256xf32>
    %184 = arith.mulf %182, %183 : vector<4x256xf32>
    %185 = arith.addf %179, %184 : vector<4x256xf32>
    %186 = vector.extract_strided_slice %3 {offsets = [0, 22], sizes = [4, 1], strides = [1, 1]} : vector<4x36xf32> to vector<4x1xf32>
    %187 = vector.extract_strided_slice %39 {offsets = [2, 0], sizes = [1, 256], strides = [1, 1]} : vector<4x256xf32> to vector<1x256xf32>
    %188 = vector.broadcast %186 : vector<4x1xf32> to vector<4x256xf32>
    %189 = vector.broadcast %187 : vector<1x256xf32> to vector<4x256xf32>
    %190 = arith.mulf %188, %189 : vector<4x256xf32>
    %191 = arith.addf %185, %190 : vector<4x256xf32>
    %192 = vector.extract_strided_slice %3 {offsets = [0, 23], sizes = [4, 1], strides = [1, 1]} : vector<4x36xf32> to vector<4x1xf32>
    %193 = vector.extract_strided_slice %39 {offsets = [3, 0], sizes = [1, 256], strides = [1, 1]} : vector<4x256xf32> to vector<1x256xf32>
    %194 = vector.broadcast %192 : vector<4x1xf32> to vector<4x256xf32>
    %195 = vector.broadcast %193 : vector<1x256xf32> to vector<4x256xf32>
    %196 = arith.mulf %194, %195 : vector<4x256xf32>
    %197 = arith.addf %191, %196 : vector<4x256xf32>
    %198 = vector.extract_strided_slice %3 {offsets = [0, 24], sizes = [4, 1], strides = [1, 1]} : vector<4x36xf32> to vector<4x1xf32>
    %199 = vector.extract_strided_slice %43 {offsets = [0, 0], sizes = [1, 256], strides = [1, 1]} : vector<4x256xf32> to vector<1x256xf32>
    %200 = vector.broadcast %198 : vector<4x1xf32> to vector<4x256xf32>
    %201 = vector.broadcast %199 : vector<1x256xf32> to vector<4x256xf32>
    %202 = arith.mulf %200, %201 : vector<4x256xf32>
    %203 = arith.addf %197, %202 : vector<4x256xf32>
    %204 = vector.extract_strided_slice %3 {offsets = [0, 25], sizes = [4, 1], strides = [1, 1]} : vector<4x36xf32> to vector<4x1xf32>
    %205 = vector.extract_strided_slice %43 {offsets = [1, 0], sizes = [1, 256], strides = [1, 1]} : vector<4x256xf32> to vector<1x256xf32>
    %206 = vector.broadcast %204 : vector<4x1xf32> to vector<4x256xf32>
    %207 = vector.broadcast %205 : vector<1x256xf32> to vector<4x256xf32>
    %208 = arith.mulf %206, %207 : vector<4x256xf32>
    %209 = arith.addf %203, %208 : vector<4x256xf32>
    %210 = vector.extract_strided_slice %3 {offsets = [0, 26], sizes = [4, 1], strides = [1, 1]} : vector<4x36xf32> to vector<4x1xf32>
    %211 = vector.extract_strided_slice %43 {offsets = [2, 0], sizes = [1, 256], strides = [1, 1]} : vector<4x256xf32> to vector<1x256xf32>
    %212 = vector.broadcast %210 : vector<4x1xf32> to vector<4x256xf32>
    %213 = vector.broadcast %211 : vector<1x256xf32> to vector<4x256xf32>
    %214 = arith.mulf %212, %213 : vector<4x256xf32>
    %215 = arith.addf %209, %214 : vector<4x256xf32>
    %216 = vector.extract_strided_slice %3 {offsets = [0, 27], sizes = [4, 1], strides = [1, 1]} : vector<4x36xf32> to vector<4x1xf32>
    %217 = vector.extract_strided_slice %43 {offsets = [3, 0], sizes = [1, 256], strides = [1, 1]} : vector<4x256xf32> to vector<1x256xf32>
    %218 = vector.broadcast %216 : vector<4x1xf32> to vector<4x256xf32>
    %219 = vector.broadcast %217 : vector<1x256xf32> to vector<4x256xf32>
    %220 = arith.mulf %218, %219 : vector<4x256xf32>
    %221 = arith.addf %215, %220 : vector<4x256xf32>
    %222 = vector.extract_strided_slice %3 {offsets = [0, 28], sizes = [4, 1], strides = [1, 1]} : vector<4x36xf32> to vector<4x1xf32>
    %223 = vector.extract_strided_slice %47 {offsets = [0, 0], sizes = [1, 256], strides = [1, 1]} : vector<4x256xf32> to vector<1x256xf32>
    %224 = vector.broadcast %222 : vector<4x1xf32> to vector<4x256xf32>
    %225 = vector.broadcast %223 : vector<1x256xf32> to vector<4x256xf32>
    %226 = arith.mulf %224, %225 : vector<4x256xf32>
    %227 = arith.addf %221, %226 : vector<4x256xf32>
    %228 = vector.extract_strided_slice %3 {offsets = [0, 29], sizes = [4, 1], strides = [1, 1]} : vector<4x36xf32> to vector<4x1xf32>
    %229 = vector.extract_strided_slice %47 {offsets = [1, 0], sizes = [1, 256], strides = [1, 1]} : vector<4x256xf32> to vector<1x256xf32>
    %230 = vector.broadcast %228 : vector<4x1xf32> to vector<4x256xf32>
    %231 = vector.broadcast %229 : vector<1x256xf32> to vector<4x256xf32>
    %232 = arith.mulf %230, %231 : vector<4x256xf32>
    %233 = arith.addf %227, %232 : vector<4x256xf32>
    %234 = vector.extract_strided_slice %3 {offsets = [0, 30], sizes = [4, 1], strides = [1, 1]} : vector<4x36xf32> to vector<4x1xf32>
    %235 = vector.extract_strided_slice %47 {offsets = [2, 0], sizes = [1, 256], strides = [1, 1]} : vector<4x256xf32> to vector<1x256xf32>
    %236 = vector.broadcast %234 : vector<4x1xf32> to vector<4x256xf32>
    %237 = vector.broadcast %235 : vector<1x256xf32> to vector<4x256xf32>
    %238 = arith.mulf %236, %237 : vector<4x256xf32>
    %239 = arith.addf %233, %238 : vector<4x256xf32>
    %240 = vector.extract_strided_slice %3 {offsets = [0, 31], sizes = [4, 1], strides = [1, 1]} : vector<4x36xf32> to vector<4x1xf32>
    %241 = vector.extract_strided_slice %47 {offsets = [3, 0], sizes = [1, 256], strides = [1, 1]} : vector<4x256xf32> to vector<1x256xf32>
    %242 = vector.broadcast %240 : vector<4x1xf32> to vector<4x256xf32>
    %243 = vector.broadcast %241 : vector<1x256xf32> to vector<4x256xf32>
    %244 = arith.mulf %242, %243 : vector<4x256xf32>
    %245 = arith.addf %239, %244 : vector<4x256xf32>
    %246 = vector.extract_strided_slice %3 {offsets = [0, 32], sizes = [4, 1], strides = [1, 1]} : vector<4x36xf32> to vector<4x1xf32>
    %247 = vector.extract_strided_slice %51 {offsets = [0, 0], sizes = [1, 256], strides = [1, 1]} : vector<4x256xf32> to vector<1x256xf32>
    %248 = vector.broadcast %246 : vector<4x1xf32> to vector<4x256xf32>
    %249 = vector.broadcast %247 : vector<1x256xf32> to vector<4x256xf32>
    %250 = arith.mulf %248, %249 : vector<4x256xf32>
    %251 = arith.addf %245, %250 : vector<4x256xf32>
    %252 = vector.extract_strided_slice %3 {offsets = [0, 33], sizes = [4, 1], strides = [1, 1]} : vector<4x36xf32> to vector<4x1xf32>
    %253 = vector.extract_strided_slice %51 {offsets = [1, 0], sizes = [1, 256], strides = [1, 1]} : vector<4x256xf32> to vector<1x256xf32>
    %254 = vector.broadcast %252 : vector<4x1xf32> to vector<4x256xf32>
    %255 = vector.broadcast %253 : vector<1x256xf32> to vector<4x256xf32>
    %256 = arith.mulf %254, %255 : vector<4x256xf32>
    %257 = arith.addf %251, %256 : vector<4x256xf32>
    %258 = vector.extract_strided_slice %3 {offsets = [0, 34], sizes = [4, 1], strides = [1, 1]} : vector<4x36xf32> to vector<4x1xf32>
    %259 = vector.extract_strided_slice %51 {offsets = [2, 0], sizes = [1, 256], strides = [1, 1]} : vector<4x256xf32> to vector<1x256xf32>
    %260 = vector.broadcast %258 : vector<4x1xf32> to vector<4x256xf32>
    %261 = vector.broadcast %259 : vector<1x256xf32> to vector<4x256xf32>
    %262 = arith.mulf %260, %261 : vector<4x256xf32>
    %263 = arith.addf %257, %262 : vector<4x256xf32>
    %264 = vector.extract_strided_slice %3 {offsets = [0, 35], sizes = [4, 1], strides = [1, 1]} : vector<4x36xf32> to vector<4x1xf32>
    %265 = vector.extract_strided_slice %51 {offsets = [3, 0], sizes = [1, 256], strides = [1, 1]} : vector<4x256xf32> to vector<1x256xf32>
    %266 = vector.broadcast %264 : vector<4x1xf32> to vector<4x256xf32>
    %267 = vector.broadcast %265 : vector<1x256xf32> to vector<4x256xf32>
    %268 = arith.mulf %266, %267 : vector<4x256xf32>
    %269 = arith.addf %263, %268 : vector<4x256xf32>
    %cst = arith.constant dense<0.000000e+00> : vector<4xf32>
    %270 = vector.multi_reduction <add>, %269, %cst [1] : vector<4x256xf32> to vector<4xf32>
    %271 = vector.shape_cast %270 : vector<4xf32> to vector<4x1xf32>
    %cst_16 = arith.constant 2.560000e+02 : f32
    %272 = vector.broadcast %cst_16 : f32 to vector<4x1xf32>
    %273 = arith.divf %271, %272 : vector<4x1xf32>
    %274 = vector.broadcast %273 : vector<4x1xf32> to vector<4x256xf32>
    %275 = arith.subf %269, %274 : vector<4x256xf32>
    %276 = arith.mulf %275, %275 : vector<4x256xf32>
    %cst_17 = arith.constant dense<0.000000e+00> : vector<4xf32>
    %277 = vector.multi_reduction <add>, %276, %cst_17 [1] : vector<4x256xf32> to vector<4xf32>
    %278 = vector.shape_cast %277 : vector<4xf32> to vector<4x1xf32>
    %cst_18 = arith.constant 2.560000e+02 : f32
    %279 = vector.broadcast %cst_18 : f32 to vector<4x1xf32>
    %280 = arith.divf %278, %279 : vector<4x1xf32>
    %cst_19 = arith.constant 9.99999974E-6 : f32
    %281 = vector.broadcast %cst_19 : f32 to vector<4x1xf32>
    %282 = arith.addf %280, %281 : vector<4x1xf32>
    %283 = math.rsqrt %282 : vector<4x1xf32>
    %284 = vector.broadcast %283 : vector<4x1xf32> to vector<4x256xf32>
    %285 = arith.mulf %275, %284 : vector<4x256xf32>
    %286 = vector.broadcast %6 : vector<4x1xf32> to vector<4x256xf32>
    %287 = arith.mulf %285, %286 : vector<4x256xf32>
    %288 = vector.broadcast %7 : vector<4x1xf32> to vector<4x256xf32>
    %289 = arith.addf %287, %288 : vector<4x256xf32>
    %cst_20 = arith.constant 0.000000e+00 : f32
    %290 = vector.broadcast %cst_20 : f32 to vector<4x256xf32>
    %291 = arith.maximumf %289, %290 : vector<4x256xf32>
    %c255_i32_21 = arith.constant 255 : i32
    %292 = tpu.dynamic_rotate %291 by %c255_i32_21 dim 1 : vector<4x256xf32>, i32 -> vector<4x256xf32>
    %c1_i32_22 = arith.constant 1 : i32
    %293 = tpu.dynamic_rotate %291 by %c1_i32_22 dim 1 : vector<4x256xf32>, i32 -> vector<4x256xf32>
    %294 = arith.select %29, %292, %293 : vector<4x256xi1>, vector<4x256xf32>
    %295 = arith.select %31, %293, %292 : vector<4x256xi1>, vector<4x256xf32>
    %c240_i32_23 = arith.constant 240 : i32
    %296 = tpu.dynamic_rotate %294 by %c240_i32_23 dim 1 : vector<4x256xf32>, i32 -> vector<4x256xf32>
    %c16_i32_24 = arith.constant 16 : i32
    %297 = tpu.dynamic_rotate %294 by %c16_i32_24 dim 1 : vector<4x256xf32>, i32 -> vector<4x256xf32>
    %298 = arith.select %33, %296, %297 : vector<4x256xi1>, vector<4x256xf32>
    %299 = arith.select %35, %297, %296 : vector<4x256xi1>, vector<4x256xf32>
    %c240_i32_25 = arith.constant 240 : i32
    %300 = tpu.dynamic_rotate %291 by %c240_i32_25 dim 1 : vector<4x256xf32>, i32 -> vector<4x256xf32>
    %c16_i32_26 = arith.constant 16 : i32
    %301 = tpu.dynamic_rotate %291 by %c16_i32_26 dim 1 : vector<4x256xf32>, i32 -> vector<4x256xf32>
    %302 = arith.select %33, %300, %301 : vector<4x256xi1>, vector<4x256xf32>
    %303 = arith.select %35, %301, %300 : vector<4x256xi1>, vector<4x256xf32>
    %c240_i32_27 = arith.constant 240 : i32
    %304 = tpu.dynamic_rotate %295 by %c240_i32_27 dim 1 : vector<4x256xf32>, i32 -> vector<4x256xf32>
    %c16_i32_28 = arith.constant 16 : i32
    %305 = tpu.dynamic_rotate %295 by %c16_i32_28 dim 1 : vector<4x256xf32>, i32 -> vector<4x256xf32>
    %306 = arith.select %33, %304, %305 : vector<4x256xi1>, vector<4x256xf32>
    %307 = arith.select %35, %305, %304 : vector<4x256xi1>, vector<4x256xf32>
    %308 = vector.shape_cast %8 : vector<4x1xf32> to vector<4x1xf32>
    %309 = vector.broadcast %308 : vector<4x1xf32> to vector<4x256xf32>
    %310 = vector.extract_strided_slice %4 {offsets = [0, 0], sizes = [4, 1], strides = [1, 1]} : vector<4x36xf32> to vector<4x1xf32>
    %311 = vector.extract_strided_slice %298 {offsets = [0, 0], sizes = [1, 256], strides = [1, 1]} : vector<4x256xf32> to vector<1x256xf32>
    %312 = vector.broadcast %310 : vector<4x1xf32> to vector<4x256xf32>
    %313 = vector.broadcast %311 : vector<1x256xf32> to vector<4x256xf32>
    %314 = arith.mulf %312, %313 : vector<4x256xf32>
    %315 = arith.addf %309, %314 : vector<4x256xf32>
    %316 = vector.extract_strided_slice %4 {offsets = [0, 1], sizes = [4, 1], strides = [1, 1]} : vector<4x36xf32> to vector<4x1xf32>
    %317 = vector.extract_strided_slice %298 {offsets = [1, 0], sizes = [1, 256], strides = [1, 1]} : vector<4x256xf32> to vector<1x256xf32>
    %318 = vector.broadcast %316 : vector<4x1xf32> to vector<4x256xf32>
    %319 = vector.broadcast %317 : vector<1x256xf32> to vector<4x256xf32>
    %320 = arith.mulf %318, %319 : vector<4x256xf32>
    %321 = arith.addf %315, %320 : vector<4x256xf32>
    %322 = vector.extract_strided_slice %4 {offsets = [0, 2], sizes = [4, 1], strides = [1, 1]} : vector<4x36xf32> to vector<4x1xf32>
    %323 = vector.extract_strided_slice %298 {offsets = [2, 0], sizes = [1, 256], strides = [1, 1]} : vector<4x256xf32> to vector<1x256xf32>
    %324 = vector.broadcast %322 : vector<4x1xf32> to vector<4x256xf32>
    %325 = vector.broadcast %323 : vector<1x256xf32> to vector<4x256xf32>
    %326 = arith.mulf %324, %325 : vector<4x256xf32>
    %327 = arith.addf %321, %326 : vector<4x256xf32>
    %328 = vector.extract_strided_slice %4 {offsets = [0, 3], sizes = [4, 1], strides = [1, 1]} : vector<4x36xf32> to vector<4x1xf32>
    %329 = vector.extract_strided_slice %298 {offsets = [3, 0], sizes = [1, 256], strides = [1, 1]} : vector<4x256xf32> to vector<1x256xf32>
    %330 = vector.broadcast %328 : vector<4x1xf32> to vector<4x256xf32>
    %331 = vector.broadcast %329 : vector<1x256xf32> to vector<4x256xf32>
    %332 = arith.mulf %330, %331 : vector<4x256xf32>
    %333 = arith.addf %327, %332 : vector<4x256xf32>
    %334 = vector.extract_strided_slice %4 {offsets = [0, 4], sizes = [4, 1], strides = [1, 1]} : vector<4x36xf32> to vector<4x1xf32>
    %335 = vector.extract_strided_slice %302 {offsets = [0, 0], sizes = [1, 256], strides = [1, 1]} : vector<4x256xf32> to vector<1x256xf32>
    %336 = vector.broadcast %334 : vector<4x1xf32> to vector<4x256xf32>
    %337 = vector.broadcast %335 : vector<1x256xf32> to vector<4x256xf32>
    %338 = arith.mulf %336, %337 : vector<4x256xf32>
    %339 = arith.addf %333, %338 : vector<4x256xf32>
    %340 = vector.extract_strided_slice %4 {offsets = [0, 5], sizes = [4, 1], strides = [1, 1]} : vector<4x36xf32> to vector<4x1xf32>
    %341 = vector.extract_strided_slice %302 {offsets = [1, 0], sizes = [1, 256], strides = [1, 1]} : vector<4x256xf32> to vector<1x256xf32>
    %342 = vector.broadcast %340 : vector<4x1xf32> to vector<4x256xf32>
    %343 = vector.broadcast %341 : vector<1x256xf32> to vector<4x256xf32>
    %344 = arith.mulf %342, %343 : vector<4x256xf32>
    %345 = arith.addf %339, %344 : vector<4x256xf32>
    %346 = vector.extract_strided_slice %4 {offsets = [0, 6], sizes = [4, 1], strides = [1, 1]} : vector<4x36xf32> to vector<4x1xf32>
    %347 = vector.extract_strided_slice %302 {offsets = [2, 0], sizes = [1, 256], strides = [1, 1]} : vector<4x256xf32> to vector<1x256xf32>
    %348 = vector.broadcast %346 : vector<4x1xf32> to vector<4x256xf32>
    %349 = vector.broadcast %347 : vector<1x256xf32> to vector<4x256xf32>
    %350 = arith.mulf %348, %349 : vector<4x256xf32>
    %351 = arith.addf %345, %350 : vector<4x256xf32>
    %352 = vector.extract_strided_slice %4 {offsets = [0, 7], sizes = [4, 1], strides = [1, 1]} : vector<4x36xf32> to vector<4x1xf32>
    %353 = vector.extract_strided_slice %302 {offsets = [3, 0], sizes = [1, 256], strides = [1, 1]} : vector<4x256xf32> to vector<1x256xf32>
    %354 = vector.broadcast %352 : vector<4x1xf32> to vector<4x256xf32>
    %355 = vector.broadcast %353 : vector<1x256xf32> to vector<4x256xf32>
    %356 = arith.mulf %354, %355 : vector<4x256xf32>
    %357 = arith.addf %351, %356 : vector<4x256xf32>
    %358 = vector.extract_strided_slice %4 {offsets = [0, 8], sizes = [4, 1], strides = [1, 1]} : vector<4x36xf32> to vector<4x1xf32>
    %359 = vector.extract_strided_slice %306 {offsets = [0, 0], sizes = [1, 256], strides = [1, 1]} : vector<4x256xf32> to vector<1x256xf32>
    %360 = vector.broadcast %358 : vector<4x1xf32> to vector<4x256xf32>
    %361 = vector.broadcast %359 : vector<1x256xf32> to vector<4x256xf32>
    %362 = arith.mulf %360, %361 : vector<4x256xf32>
    %363 = arith.addf %357, %362 : vector<4x256xf32>
    %364 = vector.extract_strided_slice %4 {offsets = [0, 9], sizes = [4, 1], strides = [1, 1]} : vector<4x36xf32> to vector<4x1xf32>
    %365 = vector.extract_strided_slice %306 {offsets = [1, 0], sizes = [1, 256], strides = [1, 1]} : vector<4x256xf32> to vector<1x256xf32>
    %366 = vector.broadcast %364 : vector<4x1xf32> to vector<4x256xf32>
    %367 = vector.broadcast %365 : vector<1x256xf32> to vector<4x256xf32>
    %368 = arith.mulf %366, %367 : vector<4x256xf32>
    %369 = arith.addf %363, %368 : vector<4x256xf32>
    %370 = vector.extract_strided_slice %4 {offsets = [0, 10], sizes = [4, 1], strides = [1, 1]} : vector<4x36xf32> to vector<4x1xf32>
    %371 = vector.extract_strided_slice %306 {offsets = [2, 0], sizes = [1, 256], strides = [1, 1]} : vector<4x256xf32> to vector<1x256xf32>
    %372 = vector.broadcast %370 : vector<4x1xf32> to vector<4x256xf32>
    %373 = vector.broadcast %371 : vector<1x256xf32> to vector<4x256xf32>
    %374 = arith.mulf %372, %373 : vector<4x256xf32>
    %375 = arith.addf %369, %374 : vector<4x256xf32>
    %376 = vector.extract_strided_slice %4 {offsets = [0, 11], sizes = [4, 1], strides = [1, 1]} : vector<4x36xf32> to vector<4x1xf32>
    %377 = vector.extract_strided_slice %306 {offsets = [3, 0], sizes = [1, 256], strides = [1, 1]} : vector<4x256xf32> to vector<1x256xf32>
    %378 = vector.broadcast %376 : vector<4x1xf32> to vector<4x256xf32>
    %379 = vector.broadcast %377 : vector<1x256xf32> to vector<4x256xf32>
    %380 = arith.mulf %378, %379 : vector<4x256xf32>
    %381 = arith.addf %375, %380 : vector<4x256xf32>
    %382 = vector.extract_strided_slice %4 {offsets = [0, 12], sizes = [4, 1], strides = [1, 1]} : vector<4x36xf32> to vector<4x1xf32>
    %383 = vector.extract_strided_slice %294 {offsets = [0, 0], sizes = [1, 256], strides = [1, 1]} : vector<4x256xf32> to vector<1x256xf32>
    %384 = vector.broadcast %382 : vector<4x1xf32> to vector<4x256xf32>
    %385 = vector.broadcast %383 : vector<1x256xf32> to vector<4x256xf32>
    %386 = arith.mulf %384, %385 : vector<4x256xf32>
    %387 = arith.addf %381, %386 : vector<4x256xf32>
    %388 = vector.extract_strided_slice %4 {offsets = [0, 13], sizes = [4, 1], strides = [1, 1]} : vector<4x36xf32> to vector<4x1xf32>
    %389 = vector.extract_strided_slice %294 {offsets = [1, 0], sizes = [1, 256], strides = [1, 1]} : vector<4x256xf32> to vector<1x256xf32>
    %390 = vector.broadcast %388 : vector<4x1xf32> to vector<4x256xf32>
    %391 = vector.broadcast %389 : vector<1x256xf32> to vector<4x256xf32>
    %392 = arith.mulf %390, %391 : vector<4x256xf32>
    %393 = arith.addf %387, %392 : vector<4x256xf32>
    %394 = vector.extract_strided_slice %4 {offsets = [0, 14], sizes = [4, 1], strides = [1, 1]} : vector<4x36xf32> to vector<4x1xf32>
    %395 = vector.extract_strided_slice %294 {offsets = [2, 0], sizes = [1, 256], strides = [1, 1]} : vector<4x256xf32> to vector<1x256xf32>
    %396 = vector.broadcast %394 : vector<4x1xf32> to vector<4x256xf32>
    %397 = vector.broadcast %395 : vector<1x256xf32> to vector<4x256xf32>
    %398 = arith.mulf %396, %397 : vector<4x256xf32>
    %399 = arith.addf %393, %398 : vector<4x256xf32>
    %400 = vector.extract_strided_slice %4 {offsets = [0, 15], sizes = [4, 1], strides = [1, 1]} : vector<4x36xf32> to vector<4x1xf32>
    %401 = vector.extract_strided_slice %294 {offsets = [3, 0], sizes = [1, 256], strides = [1, 1]} : vector<4x256xf32> to vector<1x256xf32>
    %402 = vector.broadcast %400 : vector<4x1xf32> to vector<4x256xf32>
    %403 = vector.broadcast %401 : vector<1x256xf32> to vector<4x256xf32>
    %404 = arith.mulf %402, %403 : vector<4x256xf32>
    %405 = arith.addf %399, %404 : vector<4x256xf32>
    %406 = vector.extract_strided_slice %4 {offsets = [0, 16], sizes = [4, 1], strides = [1, 1]} : vector<4x36xf32> to vector<4x1xf32>
    %407 = vector.extract_strided_slice %291 {offsets = [0, 0], sizes = [1, 256], strides = [1, 1]} : vector<4x256xf32> to vector<1x256xf32>
    %408 = vector.broadcast %406 : vector<4x1xf32> to vector<4x256xf32>
    %409 = vector.broadcast %407 : vector<1x256xf32> to vector<4x256xf32>
    %410 = arith.mulf %408, %409 : vector<4x256xf32>
    %411 = arith.addf %405, %410 : vector<4x256xf32>
    %412 = vector.extract_strided_slice %4 {offsets = [0, 17], sizes = [4, 1], strides = [1, 1]} : vector<4x36xf32> to vector<4x1xf32>
    %413 = vector.extract_strided_slice %291 {offsets = [1, 0], sizes = [1, 256], strides = [1, 1]} : vector<4x256xf32> to vector<1x256xf32>
    %414 = vector.broadcast %412 : vector<4x1xf32> to vector<4x256xf32>
    %415 = vector.broadcast %413 : vector<1x256xf32> to vector<4x256xf32>
    %416 = arith.mulf %414, %415 : vector<4x256xf32>
    %417 = arith.addf %411, %416 : vector<4x256xf32>
    %418 = vector.extract_strided_slice %4 {offsets = [0, 18], sizes = [4, 1], strides = [1, 1]} : vector<4x36xf32> to vector<4x1xf32>
    %419 = vector.extract_strided_slice %291 {offsets = [2, 0], sizes = [1, 256], strides = [1, 1]} : vector<4x256xf32> to vector<1x256xf32>
    %420 = vector.broadcast %418 : vector<4x1xf32> to vector<4x256xf32>
    %421 = vector.broadcast %419 : vector<1x256xf32> to vector<4x256xf32>
    %422 = arith.mulf %420, %421 : vector<4x256xf32>
    %423 = arith.addf %417, %422 : vector<4x256xf32>
    %424 = vector.extract_strided_slice %4 {offsets = [0, 19], sizes = [4, 1], strides = [1, 1]} : vector<4x36xf32> to vector<4x1xf32>
    %425 = vector.extract_strided_slice %291 {offsets = [3, 0], sizes = [1, 256], strides = [1, 1]} : vector<4x256xf32> to vector<1x256xf32>
    %426 = vector.broadcast %424 : vector<4x1xf32> to vector<4x256xf32>
    %427 = vector.broadcast %425 : vector<1x256xf32> to vector<4x256xf32>
    %428 = arith.mulf %426, %427 : vector<4x256xf32>
    %429 = arith.addf %423, %428 : vector<4x256xf32>
    %430 = vector.extract_strided_slice %4 {offsets = [0, 20], sizes = [4, 1], strides = [1, 1]} : vector<4x36xf32> to vector<4x1xf32>
    %431 = vector.extract_strided_slice %295 {offsets = [0, 0], sizes = [1, 256], strides = [1, 1]} : vector<4x256xf32> to vector<1x256xf32>
    %432 = vector.broadcast %430 : vector<4x1xf32> to vector<4x256xf32>
    %433 = vector.broadcast %431 : vector<1x256xf32> to vector<4x256xf32>
    %434 = arith.mulf %432, %433 : vector<4x256xf32>
    %435 = arith.addf %429, %434 : vector<4x256xf32>
    %436 = vector.extract_strided_slice %4 {offsets = [0, 21], sizes = [4, 1], strides = [1, 1]} : vector<4x36xf32> to vector<4x1xf32>
    %437 = vector.extract_strided_slice %295 {offsets = [1, 0], sizes = [1, 256], strides = [1, 1]} : vector<4x256xf32> to vector<1x256xf32>
    %438 = vector.broadcast %436 : vector<4x1xf32> to vector<4x256xf32>
    %439 = vector.broadcast %437 : vector<1x256xf32> to vector<4x256xf32>
    %440 = arith.mulf %438, %439 : vector<4x256xf32>
    %441 = arith.addf %435, %440 : vector<4x256xf32>
    %442 = vector.extract_strided_slice %4 {offsets = [0, 22], sizes = [4, 1], strides = [1, 1]} : vector<4x36xf32> to vector<4x1xf32>
    %443 = vector.extract_strided_slice %295 {offsets = [2, 0], sizes = [1, 256], strides = [1, 1]} : vector<4x256xf32> to vector<1x256xf32>
    %444 = vector.broadcast %442 : vector<4x1xf32> to vector<4x256xf32>
    %445 = vector.broadcast %443 : vector<1x256xf32> to vector<4x256xf32>
    %446 = arith.mulf %444, %445 : vector<4x256xf32>
    %447 = arith.addf %441, %446 : vector<4x256xf32>
    %448 = vector.extract_strided_slice %4 {offsets = [0, 23], sizes = [4, 1], strides = [1, 1]} : vector<4x36xf32> to vector<4x1xf32>
    %449 = vector.extract_strided_slice %295 {offsets = [3, 0], sizes = [1, 256], strides = [1, 1]} : vector<4x256xf32> to vector<1x256xf32>
    %450 = vector.broadcast %448 : vector<4x1xf32> to vector<4x256xf32>
    %451 = vector.broadcast %449 : vector<1x256xf32> to vector<4x256xf32>
    %452 = arith.mulf %450, %451 : vector<4x256xf32>
    %453 = arith.addf %447, %452 : vector<4x256xf32>
    %454 = vector.extract_strided_slice %4 {offsets = [0, 24], sizes = [4, 1], strides = [1, 1]} : vector<4x36xf32> to vector<4x1xf32>
    %455 = vector.extract_strided_slice %299 {offsets = [0, 0], sizes = [1, 256], strides = [1, 1]} : vector<4x256xf32> to vector<1x256xf32>
    %456 = vector.broadcast %454 : vector<4x1xf32> to vector<4x256xf32>
    %457 = vector.broadcast %455 : vector<1x256xf32> to vector<4x256xf32>
    %458 = arith.mulf %456, %457 : vector<4x256xf32>
    %459 = arith.addf %453, %458 : vector<4x256xf32>
    %460 = vector.extract_strided_slice %4 {offsets = [0, 25], sizes = [4, 1], strides = [1, 1]} : vector<4x36xf32> to vector<4x1xf32>
    %461 = vector.extract_strided_slice %299 {offsets = [1, 0], sizes = [1, 256], strides = [1, 1]} : vector<4x256xf32> to vector<1x256xf32>
    %462 = vector.broadcast %460 : vector<4x1xf32> to vector<4x256xf32>
    %463 = vector.broadcast %461 : vector<1x256xf32> to vector<4x256xf32>
    %464 = arith.mulf %462, %463 : vector<4x256xf32>
    %465 = arith.addf %459, %464 : vector<4x256xf32>
    %466 = vector.extract_strided_slice %4 {offsets = [0, 26], sizes = [4, 1], strides = [1, 1]} : vector<4x36xf32> to vector<4x1xf32>
    %467 = vector.extract_strided_slice %299 {offsets = [2, 0], sizes = [1, 256], strides = [1, 1]} : vector<4x256xf32> to vector<1x256xf32>
    %468 = vector.broadcast %466 : vector<4x1xf32> to vector<4x256xf32>
    %469 = vector.broadcast %467 : vector<1x256xf32> to vector<4x256xf32>
    %470 = arith.mulf %468, %469 : vector<4x256xf32>
    %471 = arith.addf %465, %470 : vector<4x256xf32>
    %472 = vector.extract_strided_slice %4 {offsets = [0, 27], sizes = [4, 1], strides = [1, 1]} : vector<4x36xf32> to vector<4x1xf32>
    %473 = vector.extract_strided_slice %299 {offsets = [3, 0], sizes = [1, 256], strides = [1, 1]} : vector<4x256xf32> to vector<1x256xf32>
    %474 = vector.broadcast %472 : vector<4x1xf32> to vector<4x256xf32>
    %475 = vector.broadcast %473 : vector<1x256xf32> to vector<4x256xf32>
    %476 = arith.mulf %474, %475 : vector<4x256xf32>
    %477 = arith.addf %471, %476 : vector<4x256xf32>
    %478 = vector.extract_strided_slice %4 {offsets = [0, 28], sizes = [4, 1], strides = [1, 1]} : vector<4x36xf32> to vector<4x1xf32>
    %479 = vector.extract_strided_slice %303 {offsets = [0, 0], sizes = [1, 256], strides = [1, 1]} : vector<4x256xf32> to vector<1x256xf32>
    %480 = vector.broadcast %478 : vector<4x1xf32> to vector<4x256xf32>
    %481 = vector.broadcast %479 : vector<1x256xf32> to vector<4x256xf32>
    %482 = arith.mulf %480, %481 : vector<4x256xf32>
    %483 = arith.addf %477, %482 : vector<4x256xf32>
    %484 = vector.extract_strided_slice %4 {offsets = [0, 29], sizes = [4, 1], strides = [1, 1]} : vector<4x36xf32> to vector<4x1xf32>
    %485 = vector.extract_strided_slice %303 {offsets = [1, 0], sizes = [1, 256], strides = [1, 1]} : vector<4x256xf32> to vector<1x256xf32>
    %486 = vector.broadcast %484 : vector<4x1xf32> to vector<4x256xf32>
    %487 = vector.broadcast %485 : vector<1x256xf32> to vector<4x256xf32>
    %488 = arith.mulf %486, %487 : vector<4x256xf32>
    %489 = arith.addf %483, %488 : vector<4x256xf32>
    %490 = vector.extract_strided_slice %4 {offsets = [0, 30], sizes = [4, 1], strides = [1, 1]} : vector<4x36xf32> to vector<4x1xf32>
    %491 = vector.extract_strided_slice %303 {offsets = [2, 0], sizes = [1, 256], strides = [1, 1]} : vector<4x256xf32> to vector<1x256xf32>
    %492 = vector.broadcast %490 : vector<4x1xf32> to vector<4x256xf32>
    %493 = vector.broadcast %491 : vector<1x256xf32> to vector<4x256xf32>
    %494 = arith.mulf %492, %493 : vector<4x256xf32>
    %495 = arith.addf %489, %494 : vector<4x256xf32>
    %496 = vector.extract_strided_slice %4 {offsets = [0, 31], sizes = [4, 1], strides = [1, 1]} : vector<4x36xf32> to vector<4x1xf32>
    %497 = vector.extract_strided_slice %303 {offsets = [3, 0], sizes = [1, 256], strides = [1, 1]} : vector<4x256xf32> to vector<1x256xf32>
    %498 = vector.broadcast %496 : vector<4x1xf32> to vector<4x256xf32>
    %499 = vector.broadcast %497 : vector<1x256xf32> to vector<4x256xf32>
    %500 = arith.mulf %498, %499 : vector<4x256xf32>
    %501 = arith.addf %495, %500 : vector<4x256xf32>
    %502 = vector.extract_strided_slice %4 {offsets = [0, 32], sizes = [4, 1], strides = [1, 1]} : vector<4x36xf32> to vector<4x1xf32>
    %503 = vector.extract_strided_slice %307 {offsets = [0, 0], sizes = [1, 256], strides = [1, 1]} : vector<4x256xf32> to vector<1x256xf32>
    %504 = vector.broadcast %502 : vector<4x1xf32> to vector<4x256xf32>
    %505 = vector.broadcast %503 : vector<1x256xf32> to vector<4x256xf32>
    %506 = arith.mulf %504, %505 : vector<4x256xf32>
    %507 = arith.addf %501, %506 : vector<4x256xf32>
    %508 = vector.extract_strided_slice %4 {offsets = [0, 33], sizes = [4, 1], strides = [1, 1]} : vector<4x36xf32> to vector<4x1xf32>
    %509 = vector.extract_strided_slice %307 {offsets = [1, 0], sizes = [1, 256], strides = [1, 1]} : vector<4x256xf32> to vector<1x256xf32>
    %510 = vector.broadcast %508 : vector<4x1xf32> to vector<4x256xf32>
    %511 = vector.broadcast %509 : vector<1x256xf32> to vector<4x256xf32>
    %512 = arith.mulf %510, %511 : vector<4x256xf32>
    %513 = arith.addf %507, %512 : vector<4x256xf32>
    %514 = vector.extract_strided_slice %4 {offsets = [0, 34], sizes = [4, 1], strides = [1, 1]} : vector<4x36xf32> to vector<4x1xf32>
    %515 = vector.extract_strided_slice %307 {offsets = [2, 0], sizes = [1, 256], strides = [1, 1]} : vector<4x256xf32> to vector<1x256xf32>
    %516 = vector.broadcast %514 : vector<4x1xf32> to vector<4x256xf32>
    %517 = vector.broadcast %515 : vector<1x256xf32> to vector<4x256xf32>
    %518 = arith.mulf %516, %517 : vector<4x256xf32>
    %519 = arith.addf %513, %518 : vector<4x256xf32>
    %520 = vector.extract_strided_slice %4 {offsets = [0, 35], sizes = [4, 1], strides = [1, 1]} : vector<4x36xf32> to vector<4x1xf32>
    %521 = vector.extract_strided_slice %307 {offsets = [3, 0], sizes = [1, 256], strides = [1, 1]} : vector<4x256xf32> to vector<1x256xf32>
    %522 = vector.broadcast %520 : vector<4x1xf32> to vector<4x256xf32>
    %523 = vector.broadcast %521 : vector<1x256xf32> to vector<4x256xf32>
    %524 = arith.mulf %522, %523 : vector<4x256xf32>
    %525 = arith.addf %519, %524 : vector<4x256xf32>
    %cst_29 = arith.constant dense<0.000000e+00> : vector<4xf32>
    %526 = vector.multi_reduction <add>, %525, %cst_29 [1] : vector<4x256xf32> to vector<4xf32>
    %527 = vector.shape_cast %526 : vector<4xf32> to vector<4x1xf32>
    %cst_30 = arith.constant 2.560000e+02 : f32
    %528 = vector.broadcast %cst_30 : f32 to vector<4x1xf32>
    %529 = arith.divf %527, %528 : vector<4x1xf32>
    %530 = vector.broadcast %529 : vector<4x1xf32> to vector<4x256xf32>
    %531 = arith.subf %525, %530 : vector<4x256xf32>
    %532 = arith.mulf %531, %531 : vector<4x256xf32>
    %cst_31 = arith.constant dense<0.000000e+00> : vector<4xf32>
    %533 = vector.multi_reduction <add>, %532, %cst_31 [1] : vector<4x256xf32> to vector<4xf32>
    %534 = vector.shape_cast %533 : vector<4xf32> to vector<4x1xf32>
    %cst_32 = arith.constant 2.560000e+02 : f32
    %535 = vector.broadcast %cst_32 : f32 to vector<4x1xf32>
    %536 = arith.divf %534, %535 : vector<4x1xf32>
    %cst_33 = arith.constant 9.99999974E-6 : f32
    %537 = vector.broadcast %cst_33 : f32 to vector<4x1xf32>
    %538 = arith.addf %536, %537 : vector<4x1xf32>
    %539 = math.rsqrt %538 : vector<4x1xf32>
    %540 = vector.broadcast %539 : vector<4x1xf32> to vector<4x256xf32>
    %541 = arith.mulf %531, %540 : vector<4x256xf32>
    %542 = vector.broadcast %9 : vector<4x1xf32> to vector<4x256xf32>
    %543 = arith.mulf %541, %542 : vector<4x256xf32>
    %544 = vector.broadcast %10 : vector<4x1xf32> to vector<4x256xf32>
    %545 = arith.addf %543, %544 : vector<4x256xf32>
    %546 = arith.addf %545, %1 : vector<4x256xf32>
    %c0_34 = arith.constant 0 : index
    %c0_35 = arith.constant 0 : index
    %c0_36 = arith.constant 0 : index
    %547 = vector.load %arg3[%c0_34, %c0_35, %c0_36] : memref<1x4x256xf32, #tpu.memory_space<vmem>>, vector<1x4x256xf32>
    %548 = vector.shape_cast %547 : vector<1x4x256xf32> to vector<4x256xf32>
    %549 = vector.shape_cast %546 : vector<4x256xf32> to vector<1x4x256xf32>
    tpu.vector_store %arg3[%c0_34, %c0_35, %c0_36], %549 {strides = array<i32>} : memref<1x4x256xf32, #tpu.memory_space<vmem>>, vector<1x4x256xf32>,
    return
  }
  func.func @transform_0(%arg0: i32) -> (i32, i32, i32) {
    %c0_i32 = arith.constant 0 : i32
    %c0_i32_0 = arith.constant 0 : i32
    %c0_i32_1 = arith.constant 0 : i32
    return %arg0, %c0_i32, %c0_i32_0 : i32, i32, i32
  }
  func.func @transform_1(%arg0: i32) -> (i32, i32) {
    %c0_i32 = arith.constant 0 : i32
    %c0_i32_0 = arith.constant 0 : i32
    %c0_i32_1 = arith.constant 0 : i32
    return %c0_i32, %c0_i32_0 : i32, i32
  }
  func.func @transform_2(%arg0: i32) -> (i32, i32, i32) {
    %c0_i32 = arith.constant 0 : i32
    %c0_i32_0 = arith.constant 0 : i32
    %c0_i32_1 = arith.constant 0 : i32
    return %arg0, %c0_i32, %c0_i32_0 : i32, i32, i32
  }
}

</mosaic_0001>

<bundles_post_ra>
// kernel: residual_block.1
= control target key start
LH: loop header
LB: loop body
LE: loop exit
PB: predicated region body
PF: predicated region fallthrough
CT: control target
= control target key end

     0   :  { %s1940_s9 = smov 0   ;;  %s2754_s0 = inlined_call_operand.vmem [shape: f32[2,4,256], index: 0, kind: input, shape index: {}]   ;;  %s2755_s1 = inlined_call_operand.vmem [shape: f32[4,78], index: 1, kind: input, shape index: {}]   ;;  %s2756_s2 = inlined_call_operand.vmem [shape: f32[2,4,256], index: 2, kind: output, shape index: {}]  }
   0x1 LB: > { %s1646_s10 = sadd.s32 4294967295, %s1841_s9   ;;  %p1650_p0 = scmp.ge.s32.totalorder %s1841_s9, 1  ;;  %s1841_s9 = sphi %s1940_s9, %s12_s9  }
   0x2   : > { %p112_p1 = scmp.lt.s32.totalorder %s1841_s9, 3 }
   0x4   : > { %p113_p2 = pnand %p1650_p0, %p112_p1 }
   0x6   : > { %116 = sbr.rel (%p113_p2) target bundleno = 1370 (0x55a), region = 28 }
   0xd   : > { %p134_p3 = scmp.lt.s32.totalorder %s1646_s10, 1  ;;  %v1843_v0 = vmov 72   ;;  %v1844_v1 = vmov 0   ;;  %s1845_s15 = smov 1   ;;  %v1976_v4 = vld [vmem:[%s2755_s1] sm:$0xf]  ;;  %v146_v16 = vlaneseq }
   0xe   : > { %1750 = vset.pattern.permute.xlu1 %v1843_v0  ;;  %1749 = vset.pattern.permute.xlu0 %v1844_v1  ;;  %s1846_s16 = smov 127   ;;  %v1847_v5 = vmov 1   ;;  %v1848_v6 = vmov 2   ;;  %v1849_v7 = vmov 3   ;;  %v1850_v8 = vmov 5   ;;  %s1852_s19 = smov 16  }
   0xf   : > { %s2769_s10 = smov (!%p134_p3, %s1646_s10), 1  ;;  %v1851_v9 = vmov 4   ;;  %v1853_v10 = vmov 6   ;;  %s1854_s20 = smov 112   ;;  %v1855_v11 = vmov 7   ;;  %v1856_v12 = vmov 9  }
  0x10   : > { %s1657_s11 = sshll.u32 %s2769_s10, 3  ;;  %v1857_v13 = vmov 10   ;;  %v1858_v14 = vmov 8   ;;  %v1859_v15 = vmov 11   ;;  %v1998_v17 = vand.u32 127, %v146_v16 }
  0x11   : > { %s1956_s14 = scalar_lea.vmem %s2754_s0, %s1657_s11  ;;  %v1860_v33 = vmov 12   ;;  %v1861_v34 = vmov 13   ;;  %v1862_v36 = vmov 14   ;;  %v1863_v38 = vmov 16   ;;  %s143_s25 = scalar_lea.vmem %s2756_s2, %s1657_s11 }
  0x12   : > { %v1959_v2 = vld [vmem:[%s1956_s14] sm:$0xff]  ;;  %v2001_v18 = vadd.s32 128, %v1998_v17  ;;  %v153_v19 = vand.u32 15, %v1998_v17  ;;  %vm195_vm0 = vcmp.lt.s32.totalorder %v1998_v17, 1  ;;  %vm188_vm1 = vcmp.lt.s32.totalorder %v1998_v17, 127 }
  0x13   : > { %191 = vrot.lane.b32.xlu1 %v1959_v2, %s1845_s15  ;;  %184 = vrot.lane.b32.xlu0 %v1959_v2, %s1846_s16  ;;  %v1967_v3 = vcombine.high %v1959_v2, %v1959_v2  ;;  %v1864_v39 = vmov 15   ;;  %v1865_v40 = vmov 19   ;;  %v1866_v42 = vmov 17  }
  0x14   : > { %v160_v20 = vand.u32 15, %v2001_v18  ;;  %vm2007_vm2 = vcmp.eq.s32.totalorder %v153_v19, 0  ;;  %vm2040_vm4 = vcmp.eq.s32.totalorder %v153_v19, 15  ;;  %v1867_v44 = vmov 22  }
  0x15   : > { %2758 = vst [vmem:[#allocation2_spill] sm:$0xff] %v1967_v3  ;;  %v1868_v45 = vmov 25   ;;  %v1869_v46 = vmov 28   ;;  %v1870_v47 = vmov 18   ;;  %v1871_v48 = vmov 31  }
  0x16   : > { %vm2011_vm3 = vcmp.eq.s32.totalorder %v160_v20, 0  ;;  %vm2056_vm5 = vcmp.eq.s32.totalorder %v160_v20, 15  ;;  %v1872_v49 = vmov 20   ;;  %v1873_v50 = vmov 34  }
  0x17   : > { %193 = vrot.lane.b32.xlu1 %v1967_v3, %s1845_s15  ;;  %186 = vrot.lane.b32.xlu0 %v1967_v3, %s1846_s16  ;;  %v1874_v51 = vmov 21   ;;  %v1875_v52 = vmov 23   ;;  %v1876_v53 = vmov 24   ;;  %v1877_v54 = vmov 26  }
  0x18   : > { %v1878_v55 = vmov 27   ;;  %v1879_v57 = vmov 29   ;;  %v1880_v59 = vmov 30   ;;  %v1881_v61 = vmov 32  }
  0x19   : > { %v1882_v62 = vmov 33   ;;  %v1883_v0 = vmov 35   ;;  %vm177_vm6 = vcmp.lt.s32.totalorder %v1998_v17, 16  ;;  %vm206_vm7 = vcmp.lt.s32.totalorder %v1998_v17, 112 }
  0x1a   : > { %vm180_vm8 = vcmp.ge.s32.totalorder %v2001_v18, 240  ;;  %vm872_vm9 = vcmask 1043456   ;;  %v1899_v23 = vmov 48   ;;  %v1900_v24 = vmov 49  }
  0x1b   : > { %253 = vperm.xlu1 %1750, %v1976_v4   ;;  %257 = vperm.xlu0 %1749, %v1976_v4   ;;  %v1904_v35 = vmov 55  }
  0x1f   : > { %1751 = vset.pattern.permute.xlu1 %v1847_v5  ;;  %1752 = vset.pattern.permute.xlu0 %v1848_v6 }
  0x20   : > { %273 = vperm.xlu1 %1751, %v1976_v4   ;;  %289 = vperm.xlu0 %1752, %v1976_v4  }
  0x24   : > { %1753 = vset.pattern.permute.xlu1 %v1849_v7  ;;  %1755 = vset.pattern.permute.xlu0 %v1850_v8 }
  0x25   : > { %305 = vperm.xlu1 %1753, %v1976_v4   ;;  %337 = vperm.xlu0 %1755, %v1976_v4  }
  0x29   : > { %1754 = vset.pattern.permute.xlu1 %v1851_v9  ;;  %225 = vrot.lane.b32.xlu0 %v1959_v2, %s1852_s19 }
  0x2a   : > { %321 = vperm.xlu1 %1754, %v1976_v4   ;;  %1756 = vset.pattern.permute.xlu0 %v1853_v10 }
  0x2d   : > { %353 = vperm.xlu0 %1756, %v1976_v4  }
  0x2e   : > { %219 = vrot.lane.b32.xlu1 %v1959_v2, %s1854_s20 }
  0x2f   : > { %1757 = vset.pattern.permute.xlu1 %v1855_v11 }
  0x31   : > { %1759 = vset.pattern.permute.xlu0 %v1856_v12 }
  0x32   : > { %221 = vrot.lane.b32.xlu1 %v1967_v3, %s1854_s20  ;;  %401 = vperm.xlu0 %1759, %v1976_v4  }
  0x36   : > { %227 = vrot.lane.b32.xlu1 %v1967_v3, %s1852_s19  ;;  %1760 = vset.pattern.permute.xlu0 %v1857_v13 }
  0x3a   : > { %369 = vperm.xlu1 %1757, %v1976_v4  }
  0x3e   : > { %1758 = vset.pattern.permute.xlu1 %v1858_v14 }
  0x3f   : > { %385 = vperm.xlu1 %1758, %v1976_v4  }
  0x43   : > { %1761 = vset.pattern.permute.xlu1 %v1859_v15 }
  0x85   : > { %v192_v21 = vpop.permute.xlu1 %191  ;;  %v185_v22 = vpop.permute.xlu0 %184 }
  0x89   : > { %v194_v25 = vpop.permute.xlu1 %193  ;;  %v187_v26 = vpop.permute.xlu0 %186 }
  0x8a   : > { %v196_v27 = vsel %vm195_vm0, %v192_v21, %v194_v25  ;;  %v197_v28 = vsel %vm195_vm0, %v194_v25, %v192_v21  ;;  %v189_v29 = vsel %vm188_vm1, %v185_v22, %v187_v26  ;;  %v190_v30 = vsel %vm188_vm1, %v187_v26, %v185_v22 }
  0x8b   : > { %v2025_v31 = vsel %vm2007_vm2, %v189_v29, %v197_v28  ;;  %v2029_v32 = vsel %vm2011_vm3, %v190_v30, %v196_v27  ;;  %v2048_v37 = vsel %vm2040_vm4, %v197_v28, %v189_v29  ;;  %v2065_v43 = vsel %vm2056_vm5, %v196_v27, %v190_v30 }
  0x8c   : > { %204 = vrot.lane.b32.xlu1 %v2029_v32, %s1854_s20  ;;  %202 = vrot.lane.b32.xlu0 %v2025_v31, %s1854_s20  ;;  %v2118_v22 = vshrl.u32 %v146_v16, 7 }
  0x8e   : > { %v2124_v26 = vsub.s32 0, %v2118_v22  ;;  %v2127_v27 = vsub.s32 1, %v2118_v22 }
  0x90   : > { %433 = vperm.xlu1 %1761, %v1976_v4   ;;  %209 = vrot.lane.b32.xlu0 %v2025_v31, %s1852_s19 }
  0x94   : > { %1762 = vset.pattern.permute.xlu1 %v1860_v33  ;;  %417 = vperm.xlu0 %1760, %v1976_v4  }
  0x95   : > { %449 = vperm.xlu1 %1762, %v1976_v4  }
  0x98   : > { %1763 = vset.pattern.permute.xlu0 %v1861_v34  ;;  %v2143_v34 = vsub.s32 2, %v2118_v22 }
  0x99   : > { %1764 = vset.pattern.permute.xlu1 %v1862_v36  ;;  %465 = vperm.xlu0 %1763, %v1976_v4  }
  0x9a   : > { %481 = vperm.xlu1 %1764, %v1976_v4   ;;  %v2084_v56 = vpop.permute.xlu1 %253  ;;  %v258_v5 = vpop.permute.xlu0 %257 }
  0x9d   : > { %241 = vrot.lane.b32.xlu0 %v2048_v37, %s1852_s19 }
  0x9e   : > { %211 = vrot.lane.b32.xlu1 %v2029_v32, %s1852_s19  ;;  %1766 = vset.pattern.permute.xlu0 %v1863_v38 }
  0x9f   : > { %1765 = vset.pattern.permute.xlu1 %v1864_v39  ;;  %v274_v58 = vpop.permute.xlu1 %273  ;;  %v290_v7 = vpop.permute.xlu0 %289 }
  0xa1   : > { %513 = vperm.xlu0 %1766, %v1976_v4  }
  0xa2   : > { %497 = vperm.xlu1 %1765, %v1976_v4  }
  0xa4   : > { %v2088_v60 = vpop.permute.xlu1 %305  ;;  %v2099_v9 = vpop.permute.xlu0 %337 }
  0xa5   : > { %1769 = vset.pattern.permute.xlu0 %v1865_v40 }
  0xa6   : > { %235 = vrot.lane.b32.xlu1 %v2048_v37, %s1854_s20  ;;  %591 = vperm.xlu0 %1769, %v1976_v4  }
  0xa7   : > { %1767 = vset.pattern.permute.xlu1 %v1866_v42 }
  0xa8   : > { %v226_v12 = vpop.permute.xlu0 %225 }
  0xa9   : > { %v2091_v63 = vpop.permute.xlu1 %321 }
  0xaa   : > { %237 = vrot.lane.b32.xlu1 %v2065_v43, %s1854_s20  ;;  %1772 = vset.pattern.permute.xlu0 %v1867_v44 }
  0xab   : > { %649 = vperm.xlu0 %1772, %v1976_v4  }
  0xac   : > { %v2107_v14 = vpop.permute.xlu0 %353 }
  0xad   : > { %v2095_v1 = vpop.permute.xlu1 %219 }
  0xae   : > { %243 = vrot.lane.b32.xlu1 %v2065_v43, %s1852_s19 }
  0xaf   : > { %1775 = vset.pattern.permute.xlu0 %v1868_v45 }
  0xb0   : > { %697 = vperm.xlu0 %1775, %v1976_v4  }
  0xb1   : > { %v2097_v6 = vpop.permute.xlu1 %221  ;;  %v2111_v19 = vpop.permute.xlu0 %401 }
  0xb2   : > { %539 = vperm.xlu1 %1767, %v1976_v4   ;;  %v2156_v40 = vsel %vm206_vm7, %v2095_v1, %v2097_v6 }
  0xb4   : > { %1778 = vset.pattern.permute.xlu0 %v1869_v46  ;;  %v2163_v46 = vsub.s32 3, %v2118_v22 }
  0xb5   : > { %745 = vperm.xlu0 %1778, %v1976_v4   ;;  %v228_v8 = vpop.permute.xlu1 %227 }
  0xb6   : > { %1768 = vset.pattern.permute.xlu1 %v1870_v47  ;;  %v230_v42 = vsel %vm177_vm6, %v228_v8, %v226_v12 }
  0xb7   : > { %565 = vperm.xlu1 %1768, %v1976_v4  }
  0xb9   : > { %1781 = vset.pattern.permute.xlu0 %v1871_v48  ;;  %v2101_v10 = vpop.permute.xlu1 %369 }
  0xba   : > { %793 = vperm.xlu0 %1781, %v1976_v4  }
  0xbb   : > { %1770 = vset.pattern.permute.xlu1 %v1872_v49 }
  0xbc   : > { %617 = vperm.xlu1 %1770, %v1976_v4  }
  0xbe   : > { %1784 = vset.pattern.permute.xlu0 %v1873_v50  ;;  %v2103_v11 = vpop.permute.xlu1 %385 }
  0xbf   : > { %841 = vperm.xlu0 %1784, %v1976_v4  }
  0xc0   : > { %1771 = vset.pattern.permute.xlu1 %v1874_v51 }
  0xc1   : > { %633 = vperm.xlu1 %1771, %v1976_v4  }
  0xc5   : > { %1773 = vset.pattern.permute.xlu1 %v1875_v52 }
  0xc6   : > { %665 = vperm.xlu1 %1773, %v1976_v4  }
  0xca   : > { %1774 = vset.pattern.permute.xlu1 %v1876_v53  ;;  %v231_v53 = vsel %vm177_vm6, %v2156_v40, %v230_v42 }
  0xcb   : > { %681 = vperm.xlu1 %1774, %v1976_v4  }
  0xcf   : > { %1776 = vset.pattern.permute.xlu1 %v1877_v54 }
  0xd0   : > { %713 = vperm.xlu1 %1776, %v1976_v4  }
  0xd4   : > { %1777 = vset.pattern.permute.xlu1 %v1878_v55 }
  0xd5   : > { %729 = vperm.xlu1 %1777, %v1976_v4  }
  0xd9   : > { %1779 = vset.pattern.permute.xlu1 %v1879_v57 }
  0xda   : > { %761 = vperm.xlu1 %1779, %v1976_v4  }
  0xde   : > { %1780 = vset.pattern.permute.xlu1 %v1880_v59  ;;  %v2180_v59 = vsel %vm177_vm6, %v226_v12, %v228_v8 }
  0xdf   : > { %777 = vperm.xlu1 %1780, %v1976_v4   ;;  %v347_v8 = vrot.slane %v2180_v59, %v2127_v27 }
  0xe3   : > { %1782 = vset.pattern.permute.xlu1 %v1881_v61 }
  0xe4   : > { %809 = vperm.xlu1 %1782, %v1976_v4  }
  0xe8   : > { %1783 = vset.pattern.permute.xlu1 %v1882_v62 }
  0xe9   : > { %825 = vperm.xlu1 %1783, %v1976_v4  }
  0xed   : > { %1785 = vset.pattern.permute.xlu1 %v1883_v0 }
  0xee   : > { %857 = vperm.xlu1 %1785, %v1976_v4  }
  0xfe   : > { %v2105_v13 = vpop.permute.xlu1 %204  ;;  %v2115_v21 = vpop.permute.xlu0 %202 }
  0xff   : > { %v2134_v16 = vsel %vm206_vm7, %v2115_v21, %v2105_v13 }
 0x102   : > { %v210_v28 = vpop.permute.xlu0 %209 }
 0x10f   : > { %v2109_v15 = vpop.permute.xlu1 %433 }
 0x113   : > { %v2165_v47 = vpop.permute.xlu0 %417 }
 0x114   : > { %v2113_v20 = vpop.permute.xlu1 %449 }
 0x118   : > { %v2191_v12 = vpop.permute.xlu0 %465 }
 0x119   : > { %v2120_v25 = vpop.permute.xlu1 %481 }
 0x11d   : > { %v212_v29 = vpop.permute.xlu1 %211 }
 0x11e   : > { %v2138_v30 = vsel %vm177_vm6, %v210_v28, %v212_v29  ;;  %v214_v33 = vsel %vm177_vm6, %v212_v29, %v210_v28 }
 0x11f   : > { %v215_v36 = vsel %vm177_vm6, %v2134_v16, %v214_v33  ;;  %v267_v38 = vrot.slane %v2138_v30, %v2124_v26  ;;  %v283_v39 = vrot.slane %v2138_v30, %v2127_v27  ;;  %v299_v49 = vrot.slane %v2138_v30, %v2143_v34 }
 0x120   : > { %v263_v44 = vrot.slane %v215_v36, %v2124_v26  ;;  %v279_v45 = vrot.slane %v215_v36, %v2127_v27  ;;  %v295_v52 = vrot.slane %v215_v36, %v2143_v34  ;;  %v315_v57 = vrot.slane %v2138_v30, %v2163_v46 }
 0x121   : > { %v269_v48 = vmul.f32 %v267_v38, %v258_v5  ;;  %v2169_v50 = vpop.permute.xlu1 %497  ;;  %v285_v55 = vmul.f32 %v283_v39, %v274_v58  ;;  %v311_v0 = vrot.slane %v215_v36, %v2163_v46  ;;  %v301_v29 = vmul.f32 %v299_v49, %v290_v7 }
 0x122   : > { %v268_v51 = vmul.f32 %v263_v44, %v258_v5  ;;  %v284_v62 = vmul.f32 %v279_v45, %v274_v58  ;;  %v331_v5 = vrot.slane %v2180_v59, %v2124_v26  ;;  %v327_v38 = vrot.slane %v231_v53, %v2124_v26 }
 0x123   : > { %v271_v54 = vadd.f32 %v269_v48, %v2084_v56  ;;  %v300_v42 = vmul.f32 %v295_v52, %v290_v7  ;;  %v317_v58 = vmul.f32 %v315_v57, %v2088_v60  ;;  %v343_v36 = vrot.slane %v231_v53, %v2127_v27 }
 0x124   : > { %v270_v61 = vadd.f32 %v268_v51, %v2084_v56  ;;  %v379_v44 = vrot.slane %v2180_v59, %v2163_v46  ;;  %v316_v48 = vmul.f32 %v311_v0, %v2088_v60  ;;  %v333_v49 = vmul.f32 %v331_v5, %v2091_v63 }
 0x125   : > { %v287_v28 = vadd.f32 %v285_v55, %v271_v54  ;;  %v2186_v33 = vpop.permute.xlu1 %235  ;;  %v359_v7 = vrot.slane %v231_v53, %v2143_v34  ;;  %v363_v51 = vrot.slane %v2180_v59, %v2143_v34  ;;  %v332_v55 = vmul.f32 %v327_v38, %v2091_v63 }
 0x126   : > { %v286_v39 = vadd.f32 %v284_v62, %v270_v61  ;;  %v349_v61 = vmul.f32 %v347_v8, %v2099_v9  ;;  %v375_v60 = vrot.slane %v231_v53, %v2163_v46  ;;  %v381_v5 = vmul.f32 %v379_v44, %v2101_v10 }
 0x127   : > { %v303_v56 = vadd.f32 %v301_v29, %v287_v28  ;;  %v348_v28 = vmul.f32 %v343_v36, %v2099_v9  ;;  %v364_v29 = vmul.f32 %v359_v7, %v2107_v14 }
 0x128   : > { %v302_v45 = vadd.f32 %v300_v42, %v286_v39  ;;  %v365_v39 = vmul.f32 %v363_v51, %v2107_v14  ;;  %v242_v42 = vpop.permute.xlu0 %241  ;;  %v380_v44 = vmul.f32 %v375_v60, %v2101_v10  ;;  %v522_v10 = vsub.s32 4, %v2118_v22 }
 0x129   : > { %v319_v52 = vadd.f32 %v317_v58, %v303_v56  ;;  %v2202_v54 = vpop.permute.xlu1 %237 }
 0x12a   : > { %v318_v57 = vadd.f32 %v316_v48, %v302_v45  ;;  %v2215_v63 = vsel %vm206_vm7, %v2186_v33, %v2202_v54 }
 0x12b   : > { %v335_v62 = vadd.f32 %v333_v49, %v319_v52 }
 0x12c   : > { %v334_v0 = vadd.f32 %v332_v55, %v318_v57 }
 0x12d   : > { %v351_v56 = vadd.f32 %v349_v61, %v335_v62  ;;  %v244_v58 = vpop.permute.xlu1 %243 }
 0x12e   : > { %v350_v3 = vadd.f32 %v348_v28, %v334_v0  ;;  %v2219_v9 = vsel %vm177_vm6, %v242_v42, %v244_v58  ;;  %v246_v53 = vsel %vm177_vm6, %v244_v58, %v242_v42  ;;  %v455_v0 = vrot.slane %v2025_v31, %v2124_v26 }
 0x12f   : > { %v247_v14 = vsel %vm177_vm6, %v2215_v63, %v246_v53  ;;  %v367_v38 = vadd.f32 %v365_v39, %v351_v56  ;;  %v395_v8 = vrot.slane %v2219_v9, %v2124_v26  ;;  %v411_v36 = vrot.slane %v2219_v9, %v2127_v27 }
 0x130   : > { %v366_v45 = vadd.f32 %v364_v29, %v350_v3  ;;  %v391_v48 = vrot.slane %v247_v14, %v2124_v26  ;;  %v407_v49 = vrot.slane %v247_v14, %v2127_v27  ;;  %v427_v52 = vrot.slane %v2219_v9, %v2143_v34 }
 0x131   : > { %v383_v7 = vadd.f32 %v381_v5, %v367_v38  ;;  %v397_v51 = vmul.f32 %v395_v8, %v2103_v11  ;;  %v2236_v55 = vpop.permute.xlu1 %539  ;;  %v423_v62 = vrot.slane %v247_v14, %v2143_v34  ;;  %v413_v28 = vmul.f32 %v411_v36, %v2111_v19 }
 0x132   : > { %v382_v57 = vadd.f32 %v380_v44, %v366_v45  ;;  %v396_v61 = vmul.f32 %v391_v48, %v2103_v11  ;;  %v443_v60 = vrot.slane %v2219_v9, %v2163_v46  ;;  %v412_v29 = vmul.f32 %v407_v49, %v2111_v19 }
 0x133   : > { %v399_v3 = vadd.f32 %v397_v51, %v383_v7  ;;  %v439_v39 = vrot.slane %v247_v14, %v2163_v46  ;;  %v459_v11 = vrot.slane %v2029_v32, %v2124_v26  ;;  %v471_v42 = vrot.slane %v2025_v31, %v2127_v27 }
 0x134   : > { %v398_v5 = vadd.f32 %v396_v61, %v382_v57  ;;  %v429_v58 = vmul.f32 %v427_v52, %v2165_v47  ;;  %v475_v53 = vrot.slane %v2029_v32, %v2127_v27  ;;  %v487_v38 = vrot.slane %v2025_v31, %v2143_v34 }
 0x135   : > { %v415_v56 = vadd.f32 %v413_v28, %v399_v3  ;;  %v428_v19 = vmul.f32 %v423_v62, %v2165_v47  ;;  %v523_v14 = vrot.slane %v1959_v2, %v522_v10  ;;  %v445_v45 = vmul.f32 %v443_v60, %v2109_v15 }
 0x136   : > { %v414_v8 = vadd.f32 %v412_v29, %v398_v5  ;;  %v566_v36 = vpop.permute.xlu1 %565  ;;  %v548_v48 = vsub.s32 5, %v2118_v22  ;;  %v491_v49 = vrot.slane %v2029_v32, %v2143_v34  ;;  %v519_v7 = vrot.slane %v1959_v2, %v2124_v26 }
 0x137   : > { %v431_v44 = vadd.f32 %v429_v58, %v415_v56  ;;  %v444_v52 = vmul.f32 %v439_v39, %v2109_v15  ;;  %v461_v57 = vmul.f32 %v459_v11, %v2113_v20  ;;  %v600_v47 = vsub.s32 7, %v2118_v22 }
 0x138   : > { %v430_v51 = vadd.f32 %v428_v19, %v414_v8  ;;  %v574_v62 = vsub.s32 6, %v2118_v22  ;;  %v460_v10 = vmul.f32 %v455_v0, %v2113_v20  ;;  %v503_v3 = vrot.slane %v2025_v31, %v2163_v46  ;;  %v514_v19 = vpop.permute.xlu0 %513 }
 0x139   : > { %v447_v61 = vadd.f32 %v445_v45, %v431_v44  ;;  %v507_v28 = vrot.slane %v2029_v32, %v2163_v46  ;;  %v477_v5 = vmul.f32 %v475_v53, %v2191_v12  ;;  %v533_v15 = vrot.slane %v523_v14, %v2124_v26 }
 0x13a   : > { %v446_v60 = vadd.f32 %v444_v52, %v430_v51  ;;  %v549_v29 = vrot.slane %v1959_v2, %v548_v48  ;;  %v476_v56 = vmul.f32 %v471_v42, %v2191_v12  ;;  %v529_v22 = vrot.slane %v519_v7, %v2124_v26 }
 0x13b   : > { %v463_v39 = vadd.f32 %v461_v57, %v447_v61  ;;  %v618_v11 = vpop.permute.xlu1 %617  ;;  %v545_v20 = vrot.slane %v1959_v2, %v2127_v27  ;;  %v493_v0 = vmul.f32 %v491_v49, %v2120_v25  ;;  %v601_v32 = vrot.slane %v1959_v2, %v600_v47 }
 0x13c   : > { %v462_v31 = vadd.f32 %v460_v10, %v446_v60  ;;  %v575_v53 = vrot.slane %v1959_v2, %v574_v62  ;;  %v492_v8 = vmul.f32 %v487_v38, %v2120_v25  ;;  %v597_v14 = vrot.slane %v1959_v2, %v2163_v46 }
 0x13d   : > { %v479_v58 = vadd.f32 %v477_v5, %v463_v39  ;;  %v571_v42 = vrot.slane %v1959_v2, %v2143_v34  ;;  %v509_v44 = vmul.f32 %v507_v28, %v2169_v50  ;;  %v535_v45 = vmul.f32 %v533_v15, %v514_v19  ;;  %v592_v5 = vpop.permute.xlu0 %591 }
 0x13e   : > { %v478_v12 = vadd.f32 %v476_v56, %v462_v31  ;;  %v559_v48 = vrot.slane %v549_v29, %v2127_v27  ;;  %v508_v7 = vmul.f32 %v503_v3, %v2169_v50  ;;  %v534_v51 = vmul.f32 %v529_v22, %v514_v19 }
 0x13f   : > { %v495_v49 = vadd.f32 %v493_v0, %v479_v58  ;;  %v555_v52 = vrot.slane %v545_v20, %v2127_v27  ;;  %v611_v57 = vrot.slane %v601_v32, %v2163_v46  ;;  %v585_v61 = vrot.slane %v575_v53, %v2143_v34 }
 0x140   : > { %v494_v25 = vadd.f32 %v492_v8, %v478_v12  ;;  %v634_v38 = vpop.permute.xlu1 %633  ;;  %v607_v2 = vrot.slane %v597_v14, %v2163_v46  ;;  %v581_v10 = vrot.slane %v571_v42, %v2143_v34  ;;  %v561_v60 = vmul.f32 %v559_v48, %v2236_v55 }
 0x141   : > { %v511_v47 = vadd.f32 %v509_v44, %v495_v49  ;;  %v560_v3 = vmul.f32 %v555_v52, %v2236_v55  ;;  %v613_v15 = vmul.f32 %v611_v57, %v592_v5  ;;  %v587_v39 = vmul.f32 %v585_v61, %v566_v36  ;;  %v650_v14 = vpop.permute.xlu0 %649 }
 0x142   : > { %v510_v62 = vadd.f32 %v508_v7, %v494_v25  ;;  %v612_v22 = vmul.f32 %v607_v2, %v592_v5  ;;  %v586_v31 = vmul.f32 %v581_v10, %v566_v36  ;;  %v627_v32 = vrot.slane %v2065_v43, %v2124_v26 }
 0x143   : > { %v537_v28 = vadd.f32 %v535_v45, %v511_v47  ;;  %v623_v53 = vrot.slane %v2048_v37, %v2124_v26  ;;  %v643_v55 = vrot.slane %v2065_v43, %v2127_v27  ;;  %v639_v36 = vrot.slane %v2048_v37, %v2127_v27 }
 0x144   : > { %v536_v50 = vadd.f32 %v534_v51, %v510_v62  ;;  %v629_v19 = vmul.f32 %v627_v32, %v618_v11  ;;  %v208_v45 = vsel %vm206_vm7, %v2105_v13, %v2115_v21  ;;  %v659_v48 = vrot.slane %v2065_v43, %v2143_v34 }
 0x145   : > { %v563_v29 = vadd.f32 %v561_v60, %v537_v28  ;;  %v666_v56 = vpop.permute.xlu1 %665  ;;  %v628_v42 = vmul.f32 %v623_v53, %v618_v11  ;;  %v645_v7 = vmul.f32 %v643_v55, %v634_v38  ;;  %v655_v51 = vrot.slane %v2048_v37, %v2143_v34  ;;  %v698_v5 = vpop.permute.xlu0 %697 }
 0x146   : > { %v562_v20 = vadd.f32 %v560_v3, %v536_v50  ;;  %v218_v11 = vsel %vm180_vm8, %v2138_v30, %v208_v45  ;;  %v644_v25 = vmul.f32 %v639_v36, %v634_v38  ;;  %v661_v57 = vmul.f32 %v659_v48, %v650_v14 }
 0x147   : > { %v589_v0 = vadd.f32 %v587_v39, %v563_v29  ;;  %v675_v61 = vrot.slane %v2065_v43, %v2163_v46  ;;  %v660_v13 = vmul.f32 %v655_v51, %v650_v14  ;;  %v671_v2 = vrot.slane %v2048_v37, %v2163_v46 }
 0x148   : > { %v588_v58 = vadd.f32 %v586_v31, %v562_v20  ;;  %v691_v28 = vrot.slane %v218_v11, %v2124_v26  ;;  %v687_v38 = vrot.slane %v2134_v16, %v2124_v26  ;;  %v224_v43 = vsel %vm206_vm7, %v2097_v6, %v2095_v1 }
 0x149   : > { %v615_v8 = vadd.f32 %v613_v15, %v589_v0  ;;  %v677_v10 = vmul.f32 %v675_v61, %v666_v56  ;;  %v676_v30 = vmul.f32 %v671_v2, %v666_v56  ;;  %v707_v3 = vrot.slane %v218_v11, %v2127_v27  ;;  %v746_v55 = vpop.permute.xlu0 %745 }
 0x14a   : > { %v614_v12 = vadd.f32 %v612_v22, %v588_v58  ;;  %v682_v44 = vpop.permute.xlu1 %681  ;;  %v703_v29 = vrot.slane %v2134_v16, %v2127_v27  ;;  %v723_v56 = vrot.slane %v218_v11, %v2143_v34  ;;  %v234_v32 = vsel %vm180_vm8, %v2180_v59, %v224_v43 }
 0x14b   : > { %v631_v49 = vadd.f32 %v629_v19, %v615_v8  ;;  %v693_v37 = vmul.f32 %v691_v28, %v682_v44  ;;  %v692_v22 = vmul.f32 %v687_v38, %v682_v44  ;;  %v709_v20 = vmul.f32 %v707_v3, %v698_v5 }
 0x14c   : > { %v630_v52 = vadd.f32 %v628_v42, %v614_v12  ;;  %v708_v0 = vmul.f32 %v703_v29, %v698_v5  ;;  %v719_v1 = vrot.slane %v2134_v16, %v2143_v34  ;;  %v739_v19 = vrot.slane %v218_v11, %v2163_v46 }
 0x14d   : > { %v647_v47 = vadd.f32 %v645_v7, %v631_v49  ;;  %v735_v42 = vrot.slane %v2134_v16, %v2163_v46  ;;  %v755_v36 = vrot.slane %v234_v32, %v2124_v26  ;;  %v751_v59 = vrot.slane %v2156_v40, %v2124_v26  ;;  %v794_v38 = vpop.permute.xlu0 %793 }
 0x14e   : > { %v646_v21 = vadd.f32 %v644_v25, %v630_v52  ;;  %v771_v11 = vrot.slane %v234_v32, %v2127_v27  ;;  %v783_v2 = vrot.slane %v2156_v40, %v2143_v34  ;;  %v799_v3 = vrot.slane %v2156_v40, %v2163_v46 }
 0x14f   : > { %v663_v62 = vadd.f32 %v661_v57, %v647_v47  ;;  %v714_v60 = vpop.permute.xlu1 %713  ;;  %v757_v7 = vmul.f32 %v755_v36, %v746_v55  ;;  %v756_v25 = vmul.f32 %v751_v59, %v746_v55  ;;  %v767_v47 = vrot.slane %v2156_v40, %v2127_v27 }
 0x150   : > { %v662_v50 = vadd.f32 %v660_v13, %v646_v21  ;;  %v725_v8 = vmul.f32 %v723_v56, %v714_v60  ;;  %v724_v12 = vmul.f32 %v719_v1, %v714_v60  ;;  %v240_v60 = vsel %vm206_vm7, %v2202_v54, %v2186_v33 }
 0x151   : > { %v679_v15 = vadd.f32 %v677_v10, %v663_v62  ;;  %v787_v62 = vrot.slane %v234_v32, %v2143_v34  ;;  %v250_v43 = vsel %vm180_vm8, %v2219_v9, %v240_v60  ;;  %v815_v33 = vrot.slane %v2215_v63, %v2124_v26 }
 0x152   : > { %v678_v39 = vadd.f32 %v676_v30, %v662_v50  ;;  %v831_v9 = vrot.slane %v2215_v63, %v2127_v27  ;;  %v835_v40 = vrot.slane %v250_v43, %v2127_v27  ;;  %v851_v1 = vrot.slane %v250_v43, %v2143_v34 }
 0x153   : > { %v695_v31 = vadd.f32 %v693_v37, %v679_v15  ;;  %v803_v15 = vrot.slane %v234_v32, %v2163_v46  ;;  %v847_v32 = vrot.slane %v2215_v63, %v2143_v34  ;;  %v867_v59 = vrot.slane %v250_v43, %v2163_v46 }
 0x154   : > { %v694_v58 = vadd.f32 %v692_v22, %v678_v39  ;;  %v730_v6 = vpop.permute.xlu1 %729  ;;  %v804_v39 = vmul.f32 %v799_v3, %v794_v38  ;;  %v1889_v3 = vmov 45  }
 0x155   : > { %v711_v53 = vadd.f32 %v709_v20, %v695_v31  ;;  %v741_v45 = vmul.f32 %v739_v19, %v730_v6  ;;  %v740_v49 = vmul.f32 %v735_v42, %v730_v6  ;;  %v805_v22 = vmul.f32 %v803_v15, %v794_v38  ;;  %v842_v6 = vpop.permute.xlu0 %841 }
 0x156   : > { %v710_v14 = vadd.f32 %v708_v0, %v694_v58  ;;  %v819_v20 = vrot.slane %v250_v43, %v2124_v26  ;;  %v853_v42 = vmul.f32 %v851_v1, %v842_v6  ;;  %v1887_v38 = vmov 41  }
 0x157   : > { %v727_v44 = vadd.f32 %v725_v8, %v711_v53  ;;  %v1888_v43 = vmov 42   ;;  %v1890_v15 = vmov 36   ;;  %v1891_v1 = vmov 46  }
 0x158   : > { %v726_v48 = vadd.f32 %v724_v12, %v710_v14  ;;  %v852_v12 = vmul.f32 %v847_v32, %v842_v6  ;;  %v1892_v6 = vmov 75  }
 0x159   : > { %v743_v51 = vadd.f32 %v741_v45, %v727_v44  ;;  %v762_v52 = vpop.permute.xlu1 %761  ;;  %v863_v45 = vrot.slane %v2215_v63, %v2163_v46 }
 0x15a   : > { %v742_v57 = vadd.f32 %v740_v49, %v726_v48  ;;  %v773_v61 = vmul.f32 %v771_v11, %v762_v52  ;;  %v772_v21 = vmul.f32 %v767_v47, %v762_v52 }
 0x15b   : > { %v759_v16 = vadd.f32 %v757_v7, %v743_v51 }
 0x15c   : > { %v758_v13 = vadd.f32 %v756_v25, %v742_v57 }
 0x15d   : > { %v775_v5 = vadd.f32 %v773_v61, %v759_v16  ;;  %v1884_v61 = vmov 73  }
 0x15e   : > { %v774_v10 = vadd.f32 %v772_v21, %v758_v13  ;;  %v778_v28 = vpop.permute.xlu1 %777  ;;  %1786 = vset.pattern.permute.xlu0 %v1884_v61  ;;  %v1885_v13 = vmov 74  }
 0x15f   : > { %v788_v50 = vmul.f32 %v783_v2, %v778_v28  ;;  %v789_v30 = vmul.f32 %v787_v62, %v778_v28  ;;  %1787 = vset.pattern.permute.xlu1 %v1885_v13 }
 0x161   : > { %v790_v37 = vadd.f32 %v788_v50, %v774_v10  ;;  %v791_v29 = vadd.f32 %v789_v30, %v775_v5  ;;  %v1886_v30 = vmov 38  }
 0x163   : > { %v810_v54 = vpop.permute.xlu1 %809  ;;  %v806_v31 = vadd.f32 %v804_v39, %v790_v37  ;;  %v807_v56 = vadd.f32 %v805_v22, %v791_v29 }
 0x164   : > { %v820_v0 = vmul.f32 %v815_v33, %v810_v54  ;;  %v821_v58 = vmul.f32 %v819_v20, %v810_v54 }
 0x166   : > { %v822_v8 = vadd.f32 %v820_v0, %v806_v31  ;;  %v823_v19 = vadd.f32 %v821_v58, %v807_v56 }
 0x168   : > { %v826_v53 = vpop.permute.xlu1 %825 }
 0x169   : > { %v836_v55 = vmul.f32 %v831_v9, %v826_v53  ;;  %v837_v14 = vmul.f32 %v835_v40, %v826_v53  ;;  %v1893_v53 = vmov 37  }
 0x16b   : > { %v838_v36 = vadd.f32 %v836_v55, %v822_v8  ;;  %v839_v44 = vadd.f32 %v837_v14, %v823_v19  ;;  %v1894_v8 = vmov 39   ;;  %v2403_v19 = vld [vmem:[%s2755_s1] sm:$0xf]  ;;  %v1895_v55 = vmov 40  }
 0x16c   : > { %v1896_v14 = vmov 43  }
 0x16d   : > { %v858_v48 = vpop.permute.xlu1 %857  ;;  %v854_v49 = vadd.f32 %v852_v12, %v838_v36  ;;  %v855_v7 = vadd.f32 %v853_v42, %v839_v44  ;;  %v1897_v12 = vmov 44  }
 0x16e   : > { %v868_v51 = vmul.f32 %v863_v45, %v858_v48  ;;  %v869_v52 = vmul.f32 %v867_v59, %v858_v48 }
 0x170   : > { %v870_v11 = vadd.f32 %v868_v51, %v854_v49  ;;  %v871_v25 = vadd.f32 %v869_v52, %v855_v7 }
 0x172   : > { %v873_v57 = vsel %vm872_vm9, %v870_v11, 0.0  ;;  %v874_v47 = vsel %vm872_vm9, %v871_v25, 0.0 }
 0x173   : > { %v875_v16 = vadd.f32 %v874_v47, %v873_v57  ;;  %v1902_v47 = vmov 52  }
 0x175   : > { %876 = vadd.xlane.f32.xlu1 %v875_v16  ;;  %v1903_v16 = vmov 51  }
 0x186   : > { %901 = vperm.xlu1 %1787, %v1976_v4  }
 0x18a   : > { %1788 = vset.pattern.permute.xlu1 %v1890_v15  ;;  %v1913_v15 = vmov 57  }
 0x202   : > { %v877_v63 = vpop.xlane.xlu1 %876 }
 0x203   : > { %v879_v21 = vmul.f32 0.00390625, %v877_v63  ;;  %v1905_v63 = vmov 53  }
 0x205   : > { %v880_v2 = vsub.f32 %v870_v11, %v879_v21  ;;  %v881_v62 = vsub.f32 %v871_v25, %v879_v21  ;;  %v1901_v11 = vmov 50  }
 0x206   : > { %v902_v31 = vpop.permute.xlu1 %901 }
 0x207   : > { %v882_v10 = vmul.f32 %v880_v2, %v880_v2  ;;  %v883_v28 = vmul.f32 %v881_v62, %v881_v62 }
 0x209   : > { %v884_v60 = vsel %vm872_vm9, %v882_v10, 0.0  ;;  %v885_v5 = vsel %vm872_vm9, %v883_v28, 0.0  ;;  %v1907_v28 = vmov 61  }
 0x20a   : > { %v886_v50 = vadd.f32 %v885_v5, %v884_v60  ;;  %v1908_v60 = vmov 64   ;;  %v1909_v5 = vmov 54  }
 0x20c   : > { %887 = vadd.xlane.f32.xlu0 %v886_v50 }
 0x222   : > { %895 = vperm.xlu0 %1786, %v1976_v4  }
 0x226   : > { %1791 = vset.pattern.permute.xlu0 %v1886_v30  ;;  %v1910_v30 = vmov 67  }
 0x227   : > { %1009 = vperm.xlu0 %1791, %v1976_v4  }
 0x22b   : > { %1794 = vset.pattern.permute.xlu0 %v1887_v38  ;;  %v1911_v38 = vmov 56  }
 0x22c   : > { %1057 = vperm.xlu0 %1794, %v1976_v4  }
 0x230   : > { %1795 = vset.pattern.permute.xlu0 %v1888_v43 }
 0x231   : > { %1073 = vperm.xlu0 %1795, %v1976_v4  }
 0x235   : > { %1798 = vset.pattern.permute.xlu0 %v1889_v3  ;;  %v1912_v3 = vmov 70  }
 0x236   : > { %1121 = vperm.xlu0 %1798, %v1976_v4  }
 0x23a   : > { %1799 = vset.pattern.permute.xlu0 %v1891_v1 }
 0x299   : > { %v888_v37 = vpop.xlane.xlu0 %887 }
 0x29a   : > { %v889_v29 = vmul.f32 0.00390625, %v888_v37 }
 0x29c   : > { %v890_v39 = vadd.f32 1e-05, %v889_v29 }
 0x29e   : > { %1829 = vrsqrt.f32 %v890_v39  ;;  %v1914_v39 = vmov 59  }
 0x2a1   : > { %v896_v33 = vpop.permute.xlu0 %895 }
 0x2a8   : > { %v1830_v22 = vpop.eup %1829 }
 0x2a9   : > { %v892_v54 = vmul.f32 %v1830_v22, %v880_v2  ;;  %v893_v20 = vmul.f32 %v1830_v22, %v881_v62  ;;  %v1906_v62 = vmov 58   ;;  %v1915_v22 = vmov 60  }
 0x2ab   : > { %v898_v56 = vmul.f32 %v896_v33, %v892_v54  ;;  %v899_v0 = vmul.f32 %v896_v33, %v893_v20  ;;  %v1916_v33 = vmov 62   ;;  %v1917_v54 = vmov 63  }
 0x2ac   : > { %v1918_v20 = vmov 65  }
 0x2ad   : > { %v904_v58 = vadd.f32 %v902_v31, %v898_v56  ;;  %v905_v9 = vadd.f32 %v902_v31, %v899_v0  ;;  %v1919_v31 = vmov 66   ;;  %v1920_v56 = vmov 68  }
 0x2ae   : > { %v1921_v0 = vmov 69  }
 0x2af   : > { %v2383_v40 = vmax.f32 %v904_v58, 0.0  ;;  %v2389_v32 = vmax.f32 %v905_v9, 0.0  ;;  %v1922_v58 = vmov 71   ;;  %v1010_v9 = vpop.permute.xlu0 %1009 }
 0x2b1   : > { %946 = vrot.lane.b32.xlu0 %v2383_v40, %s1852_s19  ;;  %908 = vrot.lane.b32.xlu1 %v2383_v40, %s1846_s16 }
 0x2b3   : > { %v1058_v1 = vpop.permute.xlu0 %1057 }
 0x2b5   : > { %910 = vrot.lane.b32.xlu1 %v2389_v32, %s1846_s16 }
 0x2b9   : > { %914 = vrot.lane.b32.xlu1 %v2383_v40, %s1845_s15 }
 0x2bd   : > { %916 = vrot.lane.b32.xlu1 %v2389_v32, %s1845_s15 }
 0x2c1   : > { %977 = vperm.xlu1 %1788, %v1976_v4  }
 0x2c5   : > { %1789 = vset.pattern.permute.xlu1 %v1892_v6  ;;  %v2502_v6 = vpop.permute.xlu0 %1073 }
 0x2c6   : > { %973 = vperm.xlu1 %1789, %v1976_v4  }
 0x2ca   : > { %1790 = vset.pattern.permute.xlu1 %v1893_v53 }
 0x2cb   : > { %993 = vperm.xlu1 %1790, %v1976_v4   ;;  %v1898_v4 = vmov 47  }
 0x2cf   : > { %1792 = vset.pattern.permute.xlu1 %v1894_v8 }
 0x2d0   : > { %1025 = vperm.xlu1 %1792, %v2403_v19  }
 0x2d4   : > { %1793 = vset.pattern.permute.xlu1 %v1895_v55  ;;  %v2506_v55 = vpop.permute.xlu0 %1121 }
 0x2d5   : > { %1041 = vperm.xlu1 %1793, %v2403_v19  }
 0x2d9   : > { %1796 = vset.pattern.permute.xlu1 %v1896_v14 }
 0x2da   : > { %1089 = vperm.xlu1 %1796, %v2403_v19  }
 0x2de   : > { %1797 = vset.pattern.permute.xlu1 %v1897_v12 }
 0x2df   : > { %1105 = vperm.xlu1 %1797, %v2403_v19  }
 0x2e3   : > { %940 = vrot.lane.b32.xlu1 %v2383_v40, %s1854_s20 }
 0x2e4   : > { %1800 = vset.pattern.permute.xlu1 %v1898_v4 }
 0x2e7   : > { %942 = vrot.lane.b32.xlu1 %v2389_v32, %s1854_s20 }
 0x2eb   : > { %948 = vrot.lane.b32.xlu1 %v2389_v32, %s1852_s19 }
 0x323   : > { %v909_v42 = vpop.permute.xlu1 %908  ;;  %v947_v12 = vpop.permute.xlu0 %946 }
 0x327   : > { %v911_v36 = vpop.permute.xlu1 %910 }
 0x328   : > { %v912_v59 = vsel %vm188_vm1, %v909_v42, %v911_v36  ;;  %v913_v48 = vsel %vm188_vm1, %v911_v36, %v909_v42 }
 0x32b   : > { %v915_v44 = vpop.permute.xlu1 %914 }
 0x32f   : > { %v917_v45 = vpop.permute.xlu1 %916 }
 0x330   : > { %v918_v49 = vsel %vm195_vm0, %v915_v44, %v917_v45  ;;  %v919_v7 = vsel %vm195_vm0, %v917_v45, %v915_v44 }
 0x331   : > { %v2425_v51 = vsel %vm2007_vm2, %v912_v59, %v919_v7  ;;  %v2429_v52 = vsel %vm2011_vm3, %v913_v48, %v918_v49  ;;  %v2446_v57 = vsel %vm2040_vm4, %v919_v7, %v912_v59  ;;  %v2463_v21 = vsel %vm2056_vm5, %v918_v49, %v913_v48 }
 0x332   : > { %924 = vrot.lane.b32.xlu0 %v2425_v51, %s1854_s20  ;;  %926 = vrot.lane.b32.xlu1 %v2429_v52, %s1854_s20 }
 0x336   : > { %930 = vrot.lane.b32.xlu0 %v2425_v51, %s1852_s19  ;;  %1153 = vperm.xlu1 %1800, %v2403_v19  }
 0x33a   : > { %1137 = vperm.xlu0 %1799, %v2403_v19   ;;  %1801 = vset.pattern.permute.xlu1 %v1899_v23 }
 0x33b   : > { %1169 = vperm.xlu1 %1801, %v2403_v19  }
 0x33e   : > { %1802 = vset.pattern.permute.xlu0 %v1900_v24 }
 0x33f   : > { %1185 = vperm.xlu0 %1802, %v2403_v19   ;;  %1803 = vset.pattern.permute.xlu1 %v1901_v11 }
 0x340   : > { %1201 = vperm.xlu1 %1803, %v2403_v19   ;;  %v2442_v25 = vpop.permute.xlu1 %977 }
 0x343   : > { %962 = vrot.lane.b32.xlu0 %v2446_v57, %s1852_s19 }
 0x344   : > { %932 = vrot.lane.b32.xlu1 %v2429_v52, %s1852_s19  ;;  %1805 = vset.pattern.permute.xlu0 %v1902_v47 }
 0x345   : > { %1804 = vset.pattern.permute.xlu1 %v1903_v16  ;;  %v2452_v61 = vpop.permute.xlu1 %973 }
 0x347   : > { %1233 = vperm.xlu0 %1805, %v2403_v19  }
 0x348   : > { %1217 = vperm.xlu1 %1804, %v2403_v19  }
 0x34a   : > { %v2456_v13 = vpop.permute.xlu1 %993 }
 0x34b   : > { %1808 = vset.pattern.permute.xlu0 %v1904_v35 }
 0x34c   : > { %1281 = vperm.xlu0 %1808, %v2403_v19   ;;  %956 = vrot.lane.b32.xlu1 %v2446_v57, %s1854_s20 }
 0x34d   : > { %1806 = vset.pattern.permute.xlu1 %v1905_v63 }
 0x34f   : > { %v2465_v2 = vpop.permute.xlu1 %1025 }
 0x350   : > { %1811 = vset.pattern.permute.xlu0 %v1906_v62  ;;  %958 = vrot.lane.b32.xlu1 %v2463_v21, %s1854_s20 }
 0x351   : > { %1329 = vperm.xlu0 %1811, %v2403_v19  }
 0x354   : > { %964 = vrot.lane.b32.xlu1 %v2463_v21, %s1852_s19  ;;  %v2472_v10 = vpop.permute.xlu1 %1041 }
 0x355   : > { %1814 = vset.pattern.permute.xlu0 %v1907_v28 }
 0x356   : > { %1377 = vperm.xlu0 %1814, %v2403_v19  }
 0x358   : > { %1249 = vperm.xlu1 %1806, %v2403_v19  }
 0x359   : > { %v2476_v41 = vpop.permute.xlu1 %1089 }
 0x35a   : > { %1817 = vset.pattern.permute.xlu0 %v1908_v60 }
 0x35b   : > { %1425 = vperm.xlu0 %1817, %v2403_v19  }
 0x35c   : > { %1807 = vset.pattern.permute.xlu1 %v1909_v5 }
 0x35d   : > { %1265 = vperm.xlu1 %1807, %v2403_v19  }
 0x35e   : > { %v2480_v50 = vpop.permute.xlu1 %1105 }
 0x35f   : > { %1820 = vset.pattern.permute.xlu0 %v1910_v30 }
 0x360   : > { %1473 = vperm.xlu0 %1820, %v2403_v19  }
 0x361   : > { %1809 = vset.pattern.permute.xlu1 %v1911_v38 }
 0x362   : > { %1297 = vperm.xlu1 %1809, %v2403_v19   ;;  %v2484_v43 = vpop.permute.xlu1 %940 }
 0x364   : > { %1823 = vset.pattern.permute.xlu0 %v1912_v3 }
 0x365   : > { %1521 = vperm.xlu0 %1823, %v2403_v19  }
 0x366   : > { %1810 = vset.pattern.permute.xlu1 %v1913_v15  ;;  %v943_v37 = vpop.permute.xlu1 %942 }
 0x367   : > { %v2490_v29 = vsel %vm206_vm7, %v943_v37, %v2484_v43  ;;  %1313 = vperm.xlu1 %1810, %v2403_v19   ;;  %v2549_v60 = vsel %vm206_vm7, %v2484_v43, %v943_v37 }
 0x36a   : > { %v949_v53 = vpop.permute.xlu1 %948 }
 0x36b   : > { %1812 = vset.pattern.permute.xlu1 %v1914_v39  ;;  %v951_v11 = vsel %vm177_vm6, %v949_v53, %v947_v12  ;;  %v2553_v5 = vsel %vm177_vm6, %v947_v12, %v949_v53 }
 0x36c   : > { %1345 = vperm.xlu1 %1812, %v2403_v19   ;;  %v952_v3 = vsel %vm177_vm6, %v2549_v60, %v951_v11  ;;  %v1067_v53 = vrot.slane %v2553_v5, %v2127_v27 }
 0x370   : > { %1813 = vset.pattern.permute.xlu1 %v1915_v22 }
 0x371   : > { %1361 = vperm.xlu1 %1813, %v2403_v19  }
 0x375   : > { %1815 = vset.pattern.permute.xlu1 %v1916_v33 }
 0x376   : > { %1393 = vperm.xlu1 %1815, %v2403_v19  }
 0x37a   : > { %1816 = vset.pattern.permute.xlu1 %v1917_v54 }
 0x37b   : > { %1409 = vperm.xlu1 %1816, %v2403_v19  }
 0x37f   : > { %1818 = vset.pattern.permute.xlu1 %v1918_v20 }
 0x380   : > { %1441 = vperm.xlu1 %1818, %v2403_v19  }
 0x384   : > { %1819 = vset.pattern.permute.xlu1 %v1919_v31 }
 0x385   : > { %1457 = vperm.xlu1 %1819, %v2403_v19  }
 0x389   : > { %1821 = vset.pattern.permute.xlu1 %v1920_v56  ;;  %v1047_v56 = vrot.slane %v952_v3, %v2124_v26 }
 0x38a   : > { %1489 = vperm.xlu1 %1821, %v2403_v19  }
 0x38e   : > { %1822 = vset.pattern.permute.xlu1 %v1921_v0 }
 0x38f   : > { %1505 = vperm.xlu1 %1822, %v2403_v19  }
 0x393   : > { %1824 = vset.pattern.permute.xlu1 %v1922_v58 }
 0x394   : > { %1537 = vperm.xlu1 %1824, %v2403_v19  }
 0x3a4   : > { %v2504_v8 = vpop.permute.xlu1 %926  ;;  %v2512_v42 = vpop.permute.xlu0 %924 }
 0x3a5   : > { %v2520_v59 = vsel %vm206_vm7, %v2512_v42, %v2504_v8 }
 0x3a8   : > { %v931_v44 = vpop.permute.xlu0 %930 }
 0x3b5   : > { %v2508_v14 = vpop.permute.xlu1 %1153 }
 0x3b9   : > { %v2539_v35 = vpop.permute.xlu0 %1137 }
 0x3ba   : > { %v2510_v4 = vpop.permute.xlu1 %1169 }
 0x3be   : > { %v2574_v12 = vpop.permute.xlu0 %1185 }
 0x3bf   : > { %v2514_v36 = vpop.permute.xlu1 %1201 }
 0x3c3   : > { %v933_v45 = vpop.permute.xlu1 %932 }
 0x3c4   : > { %v2524_v48 = vsel %vm177_vm6, %v931_v44, %v933_v45  ;;  %v935_v49 = vsel %vm177_vm6, %v933_v45, %v931_v44  ;;  %v1063_v44 = vrot.slane %v952_v3, %v2127_v27  ;;  %v1083_v45 = vrot.slane %v2553_v5, %v2143_v34 }
 0x3c5   : > { %v936_v7 = vsel %vm177_vm6, %v2520_v59, %v935_v49  ;;  %v987_v23 = vrot.slane %v2524_v48, %v2124_v26  ;;  %v1003_v24 = vrot.slane %v2524_v48, %v2127_v27  ;;  %v1019_v62 = vrot.slane %v2524_v48, %v2143_v34 }
 0x3c6   : > { %v983_v47 = vrot.slane %v936_v7, %v2124_v26  ;;  %v999_v16 = vrot.slane %v936_v7, %v2127_v27  ;;  %v1015_v38 = vrot.slane %v936_v7, %v2143_v34  ;;  %v1035_v43 = vrot.slane %v2524_v48, %v2163_v46 }
 0x3c7   : > { %v989_v63 = vmul.f32 %v987_v23, %v2442_v25  ;;  %v2544_v28 = vpop.permute.xlu1 %1217  ;;  %v1005_v39 = vmul.f32 %v1003_v24, %v2456_v13  ;;  %v1031_v33 = vrot.slane %v936_v7, %v2163_v46  ;;  %v1021_v20 = vmul.f32 %v1019_v62, %v1010_v9 }
 0x3c8   : > { %v988_v30 = vmul.f32 %v983_v47, %v2442_v25  ;;  %v1004_v22 = vmul.f32 %v999_v16, %v2456_v13  ;;  %v1051_v25 = vrot.slane %v2553_v5, %v2124_v26  ;;  %v1020_v58 = vmul.f32 %v1015_v38, %v1010_v9 }
 0x3c9   : > { %v991_v15 = vadd.f32 %v989_v63, %v2452_v61  ;;  %v1037_v13 = vmul.f32 %v1035_v43, %v2465_v2  ;;  %v1036_v7 = vmul.f32 %v1031_v33, %v2465_v2  ;;  %v1079_v9 = vrot.slane %v952_v3, %v2143_v34 }
 0x3ca   : > { %v990_v37 = vadd.f32 %v988_v30, %v2452_v61  ;;  %v1053_v23 = vmul.f32 %v1051_v25, %v2472_v10  ;;  %v1099_v24 = vrot.slane %v2553_v5, %v2163_v46  ;;  %v1052_v16 = vmul.f32 %v1047_v56, %v2472_v10 }
 0x3cb   : > { %v1007_v54 = vadd.f32 %v1005_v39, %v991_v15  ;;  %v2569_v31 = vpop.permute.xlu1 %956  ;;  %v1069_v62 = vmul.f32 %v1067_v53, %v1058_v1  ;;  %v1068_v38 = vmul.f32 %v1063_v44, %v1058_v1  ;;  %v1095_v15 = vrot.slane %v952_v3, %v2163_v46 }
 0x3cc   : > { %v1006_v0 = vadd.f32 %v1004_v22, %v990_v37  ;;  %v1084_v2 = vmul.f32 %v1079_v9, %v2502_v6  ;;  %v1085_v43 = vmul.f32 %v1083_v45, %v2502_v6  ;;  %v1101_v37 = vmul.f32 %v1099_v24, %v2476_v41  ;;  %v963_v22 = vpop.permute.xlu0 %962 }
 0x3cd   : > { %v1023_v61 = vadd.f32 %v1021_v20, %v1007_v54 }
 0x3ce   : > { %v1022_v49 = vadd.f32 %v1020_v58, %v1006_v0  ;;  %v1100_v58 = vmul.f32 %v1095_v15, %v2476_v41 }
 0x3cf   : > { %v1039_v11 = vadd.f32 %v1037_v13, %v1023_v61  ;;  %v2585_v47 = vpop.permute.xlu1 %958 }
 0x3d0   : > { %v1038_v63 = vadd.f32 %v1036_v7, %v1022_v49  ;;  %v2596_v10 = vsel %vm206_vm7, %v2569_v31, %v2585_v47 }
 0x3d1   : > { %v1055_v30 = vadd.f32 %v1053_v23, %v1039_v11  ;;  %v1495_v17 = vrot.slane %v2596_v10, %v2124_v26  ;;  %v1511_v18 = vrot.slane %v2596_v10, %v2127_v27 }
 0x3d2   : > { %v1054_v39 = vadd.f32 %v1052_v16, %v1038_v63 }
 0x3d3   : > { %v1071_v33 = vadd.f32 %v1069_v62, %v1055_v30  ;;  %v965_v25 = vpop.permute.xlu1 %964 }
 0x3d4   : > { %v1070_v54 = vadd.f32 %v1068_v38, %v1054_v39  ;;  %v2600_v1 = vsel %vm177_vm6, %v963_v22, %v965_v25  ;;  %v967_v3 = vsel %vm177_vm6, %v965_v25, %v963_v22 }
 0x3d5   : > { %v1087_v6 = vadd.f32 %v1085_v43, %v1071_v33  ;;  %v968_v20 = vsel %vm177_vm6, %v2596_v10, %v967_v3  ;;  %v1115_v56 = vrot.slane %v2600_v1, %v2124_v26  ;;  %v1131_v0 = vrot.slane %v2600_v1, %v2127_v27 }
 0x3d6   : > { %v1086_v53 = vadd.f32 %v1084_v2, %v1070_v54  ;;  %v1111_v61 = vrot.slane %v968_v20, %v2124_v26  ;;  %v1127_v13 = vrot.slane %v968_v20, %v2127_v27  ;;  %v1147_v49 = vrot.slane %v2600_v1, %v2143_v34 }
 0x3d7   : > { %v1103_v44 = vadd.f32 %v1101_v37, %v1087_v6  ;;  %v1117_v45 = vmul.f32 %v1115_v56, %v2480_v50  ;;  %v1250_v7 = vpop.permute.xlu1 %1249  ;;  %v1143_v24 = vrot.slane %v968_v20, %v2143_v34  ;;  %v1133_v41 = vmul.f32 %v1131_v0, %v2506_v55 }
 0x3d8   : > { %v1102_v23 = vadd.f32 %v1100_v58, %v1086_v53  ;;  %v1116_v9 = vmul.f32 %v1111_v61, %v2480_v50  ;;  %v1163_v16 = vrot.slane %v2600_v1, %v2163_v46  ;;  %v1132_v62 = vmul.f32 %v1127_v13, %v2506_v55 }
 0x3d9   : > { %v1119_v11 = vadd.f32 %v1117_v45, %v1103_v44  ;;  %v1159_v30 = vrot.slane %v968_v20, %v2163_v46  ;;  %v1149_v15 = vmul.f32 %v1147_v49, %v2539_v35  ;;  %v1148_v2 = vmul.f32 %v1143_v24, %v2539_v35 }
 0x3da   : > { %v1118_v63 = vadd.f32 %v1116_v9, %v1102_v23  ;;  %v1179_v43 = vrot.slane %v2429_v52, %v2124_v26  ;;  %v1165_v22 = vmul.f32 %v1163_v16, %v2508_v14  ;;  %v1175_v33 = vrot.slane %v2425_v51, %v2124_v26  ;;  %v1234_v9 = vpop.permute.xlu0 %1233 }
 0x3db   : > { %v1135_v38 = vadd.f32 %v1133_v41, %v1119_v11  ;;  %v1164_v55 = vmul.f32 %v1159_v30, %v2508_v14  ;;  %v1195_v3 = vrot.slane %v2429_v52, %v2127_v27  ;;  %v1191_v20 = vrot.slane %v2425_v51, %v2127_v27 }
 0x3dc   : > { %v1134_v39 = vadd.f32 %v1132_v62, %v1118_v63  ;;  %v1266_v50 = vpop.permute.xlu1 %1265  ;;  %v1181_v54 = vmul.f32 %v1179_v43, %v2510_v4  ;;  %v1180_v35 = vmul.f32 %v1175_v33, %v2510_v4  ;;  %v1211_v58 = vrot.slane %v2429_v52, %v2143_v34 }
 0x3dd   : > { %v1151_v37 = vadd.f32 %v1149_v15, %v1135_v38  ;;  %v1197_v0 = vmul.f32 %v1195_v3, %v2574_v12  ;;  %v1196_v14 = vmul.f32 %v1191_v20, %v2574_v12  ;;  %v1207_v13 = vrot.slane %v2425_v51, %v2143_v34 }
 0x3de   : > { %v1150_v25 = vadd.f32 %v1148_v2, %v1134_v39  ;;  %v1213_v45 = vmul.f32 %v1211_v58, %v2514_v36  ;;  %v1227_v4 = vrot.slane %v2429_v52, %v2163_v46  ;;  %v1223_v24 = vrot.slane %v2425_v51, %v2163_v46  ;;  %v1282_v33 = vpop.permute.xlu0 %1281 }
 0x3df   : > { %v1167_v6 = vadd.f32 %v1165_v22, %v1151_v37  ;;  %v1212_v23 = vmul.f32 %v1207_v13, %v2514_v36  ;;  %v1243_v12 = vrot.slane %v2389_v32, %v2124_v26  ;;  %v1239_v63 = vrot.slane %v2383_v40, %v2124_v26 }
 0x3e0   : > { %v1166_v56 = vadd.f32 %v1164_v55, %v1150_v25  ;;  %v1229_v41 = vmul.f32 %v1227_v4, %v2544_v28  ;;  %v1228_v62 = vmul.f32 %v1223_v24, %v2544_v28  ;;  %v1259_v15 = vrot.slane %v2389_v32, %v2127_v27 }
 0x3e1   : > { %v1183_v53 = vadd.f32 %v1181_v54, %v1167_v6  ;;  %v1298_v61 = vpop.permute.xlu1 %1297  ;;  %v1245_v38 = vmul.f32 %v1243_v12, %v1234_v9  ;;  %v1244_v51 = vmul.f32 %v1239_v63, %v1234_v9  ;;  %v1255_v2 = vrot.slane %v2383_v40, %v2127_v27 }
 0x3e2   : > { %v1182_v44 = vadd.f32 %v1180_v35, %v1166_v56  ;;  %v1261_v37 = vmul.f32 %v1259_v15, %v1250_v7  ;;  %v1275_v22 = vrot.slane %v2389_v32, %v2143_v34  ;;  %v1271_v55 = vrot.slane %v2383_v40, %v2143_v34 }
 0x3e3   : > { %v1199_v49 = vadd.f32 %v1197_v0, %v1183_v53  ;;  %v1260_v28 = vmul.f32 %v1255_v2, %v1250_v7  ;;  %v1291_v54 = vrot.slane %v2389_v32, %v2163_v46  ;;  %v1287_v20 = vrot.slane %v2383_v40, %v2163_v46 }
 0x3e4   : > { %v1198_v11 = vadd.f32 %v1196_v14, %v1182_v44  ;;  %v1277_v6 = vmul.f32 %v1275_v22, %v1266_v50  ;;  %v1276_v0 = vmul.f32 %v1271_v55, %v1266_v50  ;;  %v1307_v14 = vrot.slane %v2463_v21, %v2124_v26 }
 0x3e5   : > { %v1215_v16 = vadd.f32 %v1213_v45, %v1199_v49  ;;  %v1293_v58 = vmul.f32 %v1291_v54, %v1282_v33  ;;  %v1292_v7 = vmul.f32 %v1287_v20, %v1282_v33  ;;  %v1303_v44 = vrot.slane %v2446_v57, %v2124_v26  ;;  %v1330_v49 = vpop.permute.xlu0 %1329 }
 0x3e6   : > { %v1214_v52 = vadd.f32 %v1212_v23, %v1198_v11  ;;  %v1314_v30 = vpop.permute.xlu1 %1313  ;;  %v1309_v32 = vmul.f32 %v1307_v14, %v1298_v61  ;;  %v1323_v4 = vrot.slane %v2463_v21, %v2127_v27  ;;  %v1319_v50 = vrot.slane %v2446_v57, %v2127_v27 }
 0x3e7   : > { %v1231_v36 = vadd.f32 %v1229_v41, %v1215_v16  ;;  %v1308_v40 = vmul.f32 %v1303_v44, %v1298_v61  ;;  %v929_v24 = vsel %vm206_vm7, %v2504_v8, %v2512_v42  ;;  %v1339_v11 = vrot.slane %v2463_v21, %v2143_v34 }
 0x3e8   : > { %v1230_v39 = vadd.f32 %v1228_v62, %v1214_v52  ;;  %v1325_v41 = vmul.f32 %v1323_v4, %v1314_v30  ;;  %v1335_v16 = vrot.slane %v2446_v57, %v2143_v34  ;;  %v939_v61 = vsel %vm180_vm8, %v2524_v48, %v929_v24 }
 0x3e9   : > { %v1247_v43 = vadd.f32 %v1245_v38, %v1231_v36  ;;  %v1324_v62 = vmul.f32 %v1319_v50, %v1314_v30  ;;  %v1341_v52 = vmul.f32 %v1339_v11, %v1330_v49  ;;  %v1355_v36 = vrot.slane %v2463_v21, %v2163_v46 }
 0x3ea   : > { %v1246_v25 = vadd.f32 %v1244_v51, %v1230_v39  ;;  %v1340_v8 = vmul.f32 %v1335_v16, %v1330_v49  ;;  %v1351_v15 = vrot.slane %v2446_v57, %v2163_v46  ;;  %v1371_v2 = vrot.slane %v939_v61, %v2124_v26 }
 0x3eb   : > { %v1263_v3 = vadd.f32 %v1261_v37, %v1247_v43  ;;  %v1346_v35 = vpop.permute.xlu1 %1345  ;;  %v1378_v37 = vpop.permute.xlu0 %1377  ;;  %v1367_v30 = vrot.slane %v2520_v59, %v2124_v26  ;;  %v1387_v33 = vrot.slane %v939_v61, %v2127_v27  ;;  %v1447_v16 = vrot.slane %v2549_v60, %v2127_v27 }
 0x3ec   : > { %v1262_v56 = vadd.f32 %v1260_v28, %v1246_v25  ;;  %v1357_v39 = vmul.f32 %v1355_v36, %v1346_v35  ;;  %v1356_v48 = vmul.f32 %v1351_v15, %v1346_v35  ;;  %v1383_v28 = vrot.slane %v2520_v59, %v2127_v27 }
 0x3ed   : > { %v1279_v53 = vadd.f32 %v1277_v6, %v1263_v3  ;;  %v1389_v54 = vmul.f32 %v1387_v33, %v1378_v37  ;;  %v1403_v6 = vrot.slane %v939_v61, %v2143_v34  ;;  %v955_v35 = vsel %vm180_vm8, %v2553_v5, %v2490_v29 }
 0x3ee   : > { %v1278_v13 = vadd.f32 %v1276_v0, %v1262_v56  ;;  %v1388_v20 = vmul.f32 %v1383_v28, %v1378_v37  ;;  %v1399_v0 = vrot.slane %v2520_v59, %v2143_v34  ;;  %v1435_v4 = vrot.slane %v955_v35, %v2124_v26 }
 0x3ef   : > { %v1295_v45 = vadd.f32 %v1293_v58, %v1279_v53  ;;  %v1431_v29 = vrot.slane %v2549_v60, %v2124_v26  ;;  %v1451_v50 = vrot.slane %v955_v35, %v2127_v27  ;;  %v1467_v36 = vrot.slane %v955_v35, %v2143_v34 }
 0x3f0   : > { %v1294_v23 = vadd.f32 %v1292_v7, %v1278_v13  ;;  %v1362_v9 = vpop.permute.xlu1 %1361  ;;  %v1419_v7 = vrot.slane %v939_v61, %v2163_v46  ;;  %v1426_v13 = vpop.permute.xlu0 %1425 }
 0x3f1   : > { %v1311_v12 = vadd.f32 %v1309_v32, %v1295_v45  ;;  %v1373_v21 = vmul.f32 %v1371_v2, %v1362_v9  ;;  %v1372_v57 = vmul.f32 %v1367_v30, %v1362_v9  ;;  %v1415_v32 = vrot.slane %v2520_v59, %v2163_v46 }
 0x3f2   : > { %v1310_v63 = vadd.f32 %v1308_v40, %v1294_v23  ;;  %v1437_v9 = vmul.f32 %v1435_v4, %v1426_v13 }
 0x3f3   : > { %v1327_v38 = vadd.f32 %v1325_v41, %v1311_v12  ;;  %v1436_v12 = vmul.f32 %v1431_v29, %v1426_v13 }
 0x3f4   : > { %v1326_v42 = vadd.f32 %v1324_v62, %v1310_v63 }
 0x3f5   : > { %v1343_v51 = vadd.f32 %v1341_v52, %v1327_v38  ;;  %v1394_v43 = vpop.permute.xlu1 %1393  ;;  %v1463_v38 = vrot.slane %v2549_v60, %v2143_v34 }
 0x3f6   : > { %v1342_v22 = vadd.f32 %v1340_v8, %v1326_v42  ;;  %v1405_v14 = vmul.f32 %v1403_v6, %v1394_v43  ;;  %v1404_v45 = vmul.f32 %v1399_v0, %v1394_v43  ;;  %v1474_v8 = vpop.permute.xlu0 %1473 }
 0x3f7   : > { %v1359_v25 = vadd.f32 %v1357_v39, %v1343_v51  ;;  %v961_v51 = vsel %vm206_vm7, %v2585_v47, %v2569_v31  ;;  %v1483_v39 = vrot.slane %v955_v35, %v2163_v46 }
 0x3f8   : > { %v1358_v55 = vadd.f32 %v1356_v48, %v1342_v22  ;;  %v971_v37 = vsel %vm180_vm8, %v2600_v1, %v961_v51  ;;  %v1479_v22 = vrot.slane %v2549_v60, %v2163_v46 }
 0x3f9   : > { %v1375_v3 = vadd.f32 %v1373_v21, %v1359_v25  ;;  %v1485_v48 = vmul.f32 %v1483_v39, %v1474_v8  ;;  %v1499_v31 = vrot.slane %v971_v37, %v2124_v26  ;;  %v1515_v1 = vrot.slane %v971_v37, %v2127_v27 }
 0x3fa   : > { %v1374_v56 = vadd.f32 %v1372_v57, %v1358_v55  ;;  %v1410_v58 = vpop.permute.xlu1 %1409  ;;  %v1484_v25 = vmul.f32 %v1479_v22, %v1474_v8  ;;  %v1522_v60 = vpop.permute.xlu0 %1521  ;;  %v1547_v27 = vrot.slane %v971_v37, %v2163_v46  ;;  %v2767_v22 = vld [vmem:[#allocation2_spill] sm:$0xff] }
 0x3fb   : > { %v1391_v53 = vadd.f32 %v1389_v54, %v1375_v3  ;;  %v1421_v23 = vmul.f32 %v1419_v7, %v1410_v58  ;;  %v1420_v40 = vmul.f32 %v1415_v32, %v1410_v58  ;;  %v1527_v54 = vrot.slane %v2596_v10, %v2143_v34 }
 0x3fc   : > { %v1390_v44 = vadd.f32 %v1388_v20, %v1374_v56  ;;  %v1531_v3 = vrot.slane %v971_v37, %v2143_v34  ;;  %v1543_v7 = vrot.slane %v2596_v10, %v2163_v46 }
 0x3fd   : > { %v1407_v49 = vadd.f32 %v1405_v14, %v1391_v53  ;;  %v1532_v0 = vmul.f32 %v1527_v54, %v1522_v60 }
 0x3fe   : > { %v1406_v5 = vadd.f32 %v1404_v45, %v1390_v44  ;;  %v1533_v58 = vmul.f32 %v1531_v3, %v1522_v60 }
 0x3ff   : > { %v1423_v24 = vadd.f32 %v1421_v23, %v1407_v49  ;;  %v1442_v11 = vpop.permute.xlu1 %1441 }
 0x400   : > { %v1422_v41 = vadd.f32 %v1420_v40, %v1406_v5  ;;  %v1453_v59 = vmul.f32 %v1451_v50, %v1442_v11  ;;  %v1452_v62 = vmul.f32 %v1447_v16, %v1442_v11  ;;  %v1923_v40 = vmov 76  }
 0x401   : > { %v1439_v61 = vadd.f32 %v1437_v9, %v1423_v24  ;;  %1825 = vset.pattern.permute.xlu0 %v1923_v40  ;;  %v1924_v50 = vmov 77  }
 0x402   : > { %v1438_v63 = vadd.f32 %v1436_v12, %v1422_v41  ;;  %1826 = vset.pattern.permute.xlu1 %v1924_v50 }
 0x403   : > { %v1455_v52 = vadd.f32 %v1453_v59, %v1439_v61 }
 0x404   : > { %v1454_v42 = vadd.f32 %v1452_v62, %v1438_v63  ;;  %v1458_v15 = vpop.permute.xlu1 %1457 }
 0x405   : > { %v1468_v2 = vmul.f32 %v1463_v38, %v1458_v15  ;;  %v1469_v43 = vmul.f32 %v1467_v36, %v1458_v15 }
 0x407   : > { %v1470_v30 = vadd.f32 %v1468_v2, %v1454_v42  ;;  %v1471_v33 = vadd.f32 %v1469_v43, %v1455_v52  ;;  %v1834_v43 = vld [vmem:[%s1956_s14] sm:$0xff] }
 0x409   : > { %v1487_v21 = vadd.f32 %v1485_v48, %v1471_v33  ;;  %v1490_v47 = vpop.permute.xlu1 %1489  ;;  %v1486_v28 = vadd.f32 %v1484_v25, %v1470_v30 }
 0x40a   : > { %v1500_v55 = vmul.f32 %v1495_v17, %v1490_v47  ;;  %v1501_v57 = vmul.f32 %v1499_v31, %v1490_v47 }
 0x40c   : > { %v1502_v20 = vadd.f32 %v1500_v55, %v1486_v28  ;;  %v1503_v35 = vadd.f32 %v1501_v57, %v1487_v21 }
 0x40e   : > { %v1506_v6 = vpop.permute.xlu1 %1505 }
 0x40f   : > { %v1516_v56 = vmul.f32 %v1511_v18, %v1506_v6  ;;  %v1517_v26 = vmul.f32 %v1515_v1, %v1506_v6 }
 0x411   : > { %v1518_v53 = vadd.f32 %v1516_v56, %v1502_v20  ;;  %v1519_v14 = vadd.f32 %v1517_v26, %v1503_v35 }
 0x413   : > { %v1535_v13 = vadd.f32 %v1533_v58, %v1519_v14  ;;  %v1538_v44 = vpop.permute.xlu1 %1537  ;;  %v1534_v45 = vadd.f32 %v1532_v0, %v1518_v53 }
 0x414   : > { %v1548_v32 = vmul.f32 %v1543_v7, %v1538_v44  ;;  %v1549_v4 = vmul.f32 %v1547_v27, %v1538_v44 }
 0x416   : > { %v1550_v34 = vadd.f32 %v1548_v32, %v1534_v45  ;;  %v1551_v49 = vadd.f32 %v1549_v4, %v1535_v13 }
 0x418   : > { %v1552_v23 = vsel %vm872_vm9, %v1550_v34, 0.0  ;;  %v1553_v29 = vsel %vm872_vm9, %v1551_v49, 0.0 }
 0x419   : > { %v1554_v5 = vadd.f32 %v1553_v29, %v1552_v23 }
 0x41b   : > { %1555 = vadd.xlane.f32.xlu1 %v1554_v5 }
 0x42c   : > { %1579 = vperm.xlu1 %1826, %v2403_v19  }
 0x4a8   : > { %v1556_v46 = vpop.xlane.xlu1 %1555 }
 0x4a9   : > { %v1557_v10 = vmul.f32 0.00390625, %v1556_v46 }
 0x4ab   : > { %v1558_v9 = vsub.f32 %v1550_v34, %v1557_v10  ;;  %v1559_v24 = vsub.f32 %v1551_v49, %v1557_v10 }
 0x4ac   : > { %v1580_v42 = vpop.permute.xlu1 %1579 }
 0x4ad   : > { %v1560_v11 = vmul.f32 %v1558_v9, %v1558_v9  ;;  %v1561_v12 = vmul.f32 %v1559_v24, %v1559_v24 }
 0x4af   : > { %v1562_v41 = vsel %vm872_vm9, %v1560_v11, 0.0  ;;  %v1563_v16 = vsel %vm872_vm9, %v1561_v12, 0.0 }
 0x4b0   : > { %v1564_v59 = vadd.f32 %v1563_v16, %v1562_v41 }
 0x4b2   : > { %1565 = vadd.xlane.f32.xlu0 %v1564_v59 }
 0x4c8   : > { %1573 = vperm.xlu0 %1825, %v2403_v19  }
 0x4cc   : > { %1827 = vset.pattern.permute.xlu0 %v1924_v50 }
 0x53f   : > { %v1566_v61 = vpop.xlane.xlu0 %1565 }
 0x540   : > { %v1567_v63 = vmul.f32 0.00390625, %v1566_v61 }
 0x542   : > { %v1568_v62 = vadd.f32 1e-05, %v1567_v63 }
 0x544   : > { %1831 = vrsqrt.f32 %v1568_v62 }
 0x547   : > { %v1574_v38 = vpop.permute.xlu0 %1573 }
 0x54e   : > { %v1832_v52 = vpop.eup %1831 }
 0x54f   : > { %v1570_v36 = vmul.f32 %v1832_v52, %v1558_v9  ;;  %v1571_v8 = vmul.f32 %v1832_v52, %v1559_v24 }
 0x551   : > { %v1576_v15 = vmul.f32 %v1574_v38, %v1570_v36  ;;  %v1577_v51 = vmul.f32 %v1574_v38, %v1571_v8 }
 0x553   : > { %v1582_v39 = vadd.f32 %v1580_v42, %v1576_v15  ;;  %v1583_v2 = vadd.f32 %v1580_v42, %v1577_v51 }
 0x555   : > { %v1584_v37 = vadd.f32 %v1834_v43, %v1582_v39  ;;  %v1585_v48 = vadd.f32 %v1583_v2, %v2767_v22 }
 0x557   : > { %v1588_v19 = vcombine.low %v1584_v37, %v1585_v48 }
 0x559   : > { %1590 = vst [vmem:[%s143_s25] sm:$0xff] %v1588_v19 }
 0x55a PF: > { %s12_s9 = sadd.s32 1, %s1841_s9  }
 0x55b   : > { %p9_p4 = scmp.ge.s32.totalorder %s12_s9, 4  }
 0x55d   :  { %11 = sbr.rel (!%p9_p4) target bundleno = 1 (0x1), region = 58 }

</bundles_post_ra>
